<compile_context>
chip_gen: v6e
topology: v6e:2x2x1
jax: 0.10.0
libtpu: 0.0.40
codegen_flags: <defaults>
</compile_context>

<pallas_src>
import functools

import numpy as np
import jax
import jax.numpy as jnp
from jax import lax
from jax.experimental import pallas as pl
from jax.experimental.pallas import tpu as pltpu

_EPS = 1e-5


# ----------------------------- kernel helpers ------------------------------ #

def _conv3x3(src_ref, w_ref, m_ref, *, halo, stride_h, stride_w):
    """3x3 'same' conv as 9 whole-tensor MXU dots, f32 accumulation.

    src_ref : (C_in, N + 2*halo) flat activations, lane order (h, w, b), with
              halo = stride_h + stride_w zero lanes on each side so every tap
              window is an in-bounds static lane slice.
    w_ref   : (9, C_out, C_in) per-tap weights, tap index t = kh*3 + kw.
    m_ref   : (9, 1, N) validity masks (zero where a horizontal tap would
              bleed into the neighbouring image row).
    returns : (C_out, N) float32
    """
    co = w_ref.shape[1]
    n = m_ref.shape[2]
    acc = jnp.zeros((co, n), jnp.float32)
    for t in range(9):
        dh, dw = t // 3 - 1, t % 3 - 1
        off = halo + dh * stride_h + dw * stride_w          # static, >= 0
        slab = src_ref[:, pl.ds(off, n)]
        if dw != 0:  # vertical out-of-range taps already read the zero halo
            slab = slab * m_ref[t]
        acc = acc + jnp.dot(w_ref[t], slab, preferred_element_type=jnp.float32)
    return acc


# --------------------------------- kernel ---------------------------------- #

def resblock_kernel(x_ref, m_ref,
                    w1_ref, b1_ref, g1_ref, be1_ref,
                    w2_ref, b2_ref, g2_ref, be2_ref,
                    out_ref, yext_ref, *, halo, stride_h, stride_w):
    C, N = out_ref.shape
    inv_n = 1.0 / float(N)                  # BN normalizer: batch * H * W

    conv = functools.partial(_conv3x3, halo=halo,
                             stride_h=stride_h, stride_w=stride_w)

    # ---- conv1 + bias (9 whole-tensor dots) --------------------------------
    z1 = conv(x_ref, w1_ref, m_ref) + b1_ref[...]

    # ---- BN1 (training-mode batch stats, biased var) + ReLU -----------------
    mean1 = jnp.sum(z1, axis=1, keepdims=True) * inv_n
    zc1 = z1 - mean1
    var1 = jnp.sum(zc1 * zc1, axis=1, keepdims=True) * inv_n    # centered, >= 0
    y = jnp.maximum(g1_ref[...] * zc1 * lax.rsqrt(var1 + _EPS) + be1_ref[...],
                    0.0)

    # ---- stage relu(bn1(conv1)) into the halo-padded scratch for conv2 ------
    yext_ref[:, pl.ds(0, halo)] = jnp.zeros((C, halo), jnp.float32)
    yext_ref[:, pl.ds(halo + N, halo)] = jnp.zeros((C, halo), jnp.float32)
    yext_ref[:, pl.ds(halo, N)] = y

    # ---- conv2 + bias --------------------------------------------------------
    z2 = conv(yext_ref, w2_ref, m_ref) + b2_ref[...]

    # ---- BN2 + residual + ReLU (single lane-dense store) ---------------------
    mean2 = jnp.sum(z2, axis=1, keepdims=True) * inv_n
    zc2 = z2 - mean2
    var2 = jnp.sum(zc2 * zc2, axis=1, keepdims=True) * inv_n
    res = x_ref[:, pl.ds(halo, N)]
    out = g2_ref[...] * zc2 * lax.rsqrt(var2 + _EPS) + be2_ref[...] + res
    out_ref[...] = jnp.maximum(out, 0.0)


# -------------------------------- wrapper ----------------------------------- #

def residual_block_pallas(x_nchw, params):
    """x_nchw: (B, C, H, W) float32. Returns (B, C, H, W) float32."""
    B, C, H, W = x_nchw.shape
    WB = W * B                      # lane stride for h+1
    N = H * WB                      # lane-dense flat spatial*batch extent
    halo = WB + B                   # max |tap shift|; zero lanes on each side

    # Layout glue: NCHW -> (C, H, W, B) -> (C, H*W*B), plus halo lane padding.
    xf = jnp.transpose(x_nchw, (1, 2, 3, 0)).reshape(C, N)
    x_ext = jnp.pad(xf, ((0, 0), (halo, halo)))

    # Per-tap validity masks (only the dw != 0 ones are used in-kernel: they
    # kill the row-crossing bleed; vertical out-of-range reads hit the halo).
    p = np.arange(N)
    hh, ww = p // WB, (p // B) % W
    masks = np.zeros((9, 1, N), np.float32)
    for t in range(9):
        dh, dw = t // 3 - 1, t % 3 - 1
        masks[t, 0] = (((hh + dh) >= 0) & ((hh + dh) < H)
                       & ((ww + dw) >= 0) & ((ww + dw) < W)).astype(np.float32)
    masks = jnp.asarray(masks)

    def prep_w(w_oihw):  # torch (co, ci, kh, kw) -> (9, co, ci), tap = kh*3+kw
        return jnp.transpose(w_oihw, (2, 3, 0, 1)).reshape(9, C, C)

    args = (
        x_ext, masks,
        prep_w(params["w1"]), params["b1"].reshape(C, 1),
        params["g1"].reshape(C, 1), params["be1"].reshape(C, 1),
        prep_w(params["w2"]), params["b2"].reshape(C, 1),
        params["g2"].reshape(C, 1), params["be2"].reshape(C, 1),
    )

    vmem = pltpu.MemorySpace.VMEM
    kernel = functools.partial(resblock_kernel, halo=halo,
                               stride_h=WB, stride_w=B)
    out = pl.pallas_call(
        kernel,
        out_shape=jax.ShapeDtypeStruct((C, N), jnp.float32),
        in_specs=[pl.BlockSpec(memory_space=vmem)] * len(args),
        out_specs=pl.BlockSpec(memory_space=vmem),
        scratch_shapes=[
            pltpu.VMEM((C, N + 2 * halo), jnp.float32),   # halo-padded relu(bn1)
        ],
        # Actual footprint ~0.2 MiB; 4 MiB leaves ample headroom and stays far
        # under v7x's 64 MiB physical VMEM.
        compiler_params=pltpu.CompilerParams(vmem_limit_bytes=4 * 1024 * 1024),
    )(*args)

    # (C, H*W*B) -> (B, C, H, W)
    return jnp.transpose(out.reshape(C, H, W, B), (3, 0, 1, 2))


# ------------------------- pure-JAX reference (check) ----------------------- #

def residual_block_ref(x, params, eps=1e-5):
    def conv(h, w, b):
        y = jax.lax.conv_general_dilated(
            h, w, window_strides=(1, 1), padding=((1, 1), (1, 1)),
            dimension_numbers=("NCHW", "OIHW", "NCHW"),
            precision=jax.lax.Precision.HIGHEST)
        return y + b[None, :, None, None]

    def bn(y, g, be):
        mean = jnp.mean(y, axis=(0, 2, 3), keepdims=True)
        var = jnp.mean((y - mean) ** 2, axis=(0, 2, 3), keepdims=True)
        return (g[None, :, None, None] * (y - mean) * jax.lax.rsqrt(var + eps)
                + be[None, :, None, None])

    out = jax.nn.relu(bn(conv(x, params["w1"], params["b1"]),
                         params["g1"], params["be1"]))
    out = bn(conv(out, params["w2"], params["b2"]), params["g2"], params["be2"])
    return jax.nn.relu(out + x)


# ---------------------------------- main ------------------------------------ #

if __name__ == "__main__":
    B, C, H, W = 2, 4, 16, 16

    key = jax.random.PRNGKey(0)
    keys = jax.random.split(key, 9)
    params = {
        "w1": 0.2 * jax.random.normal(keys[0], (C, C, 3, 3), jnp.float32),
        "b1": 0.1 * jax.random.normal(keys[1], (C,), jnp.float32),
        "g1": 1.0 + 0.1 * jax.random.normal(keys[2], (C,), jnp.float32),
        "be1": 0.1 * jax.random.normal(keys[3], (C,), jnp.float32),
        "w2": 0.2 * jax.random.normal(keys[4], (C, C, 3, 3), jnp.float32),
        "b2": 0.1 * jax.random.normal(keys[5], (C,), jnp.float32),
        "g2": 1.0 + 0.1 * jax.random.normal(keys[6], (C,), jnp.float32),
        "be2": 0.1 * jax.random.normal(keys[7], (C,), jnp.float32),
    }
    x = jax.random.normal(keys[8], (B, C, H, W), jnp.float32)

    out = jax.block_until_ready(residual_block_pallas(x, params))
    ref = jax.block_until_ready(residual_block_ref(x, params))

    err = float(jnp.max(jnp.abs(out - ref)))
    assert out.shape == (B, C, H, W)
    assert err < 1e-4, f"max abs error {err}"
    print("KERNEL_OK")
</pallas_src>

<mosaic_0001>
module attributes {stable_mosaic.version = 11 : i64} {
  func.func @resblock_kernel(%arg0: memref<4x580xf32, #tpu.memory_space<vmem>>, %arg1: memref<9x1x512xf32, #tpu.memory_space<vmem>>, %arg2: memref<9x4x4xf32, #tpu.memory_space<vmem>>, %arg3: memref<4x1xf32, #tpu.memory_space<vmem>>, %arg4: memref<4x1xf32, #tpu.memory_space<vmem>>, %arg5: memref<4x1xf32, #tpu.memory_space<vmem>>, %arg6: memref<9x4x4xf32, #tpu.memory_space<vmem>>, %arg7: memref<4x1xf32, #tpu.memory_space<vmem>>, %arg8: memref<4x1xf32, #tpu.memory_space<vmem>>, %arg9: memref<4x1xf32, #tpu.memory_space<vmem>>, %arg10: memref<4x512xf32, #tpu.memory_space<vmem>>, %arg11: memref<4x580xf32, #tpu.memory_space<vmem>>) attributes {dimension_semantics = [], scalar_prefetch = 0 : i64, scratch_operands = 1 : i64, tpu.core_type = #tpu.core_type<tc>} {
    %cst = arith.constant 0.000000e+00 : f32
    %0 = vector.broadcast %cst : f32 to vector<4x512xf32>
    %c0 = arith.constant 0 : index
    %c0_0 = arith.constant 0 : index
    %1 = vector.load %arg0[%c0, %c0_0] : memref<4x580xf32, #tpu.memory_space<vmem>>, vector<4x512xf32>
    %c0_1 = arith.constant 0 : index
    %c0_2 = arith.constant 0 : index
    %c0_3 = arith.constant 0 : index
    %2 = vector.load %arg1[%c0_1, %c0_2, %c0_3] : memref<9x1x512xf32, #tpu.memory_space<vmem>>, vector<1x1x512xf32>
    %3 = vector.shape_cast %2 : vector<1x1x512xf32> to vector<1x512xf32>
    %4 = vector.broadcast %3 : vector<1x512xf32> to vector<4x512xf32>
    %5 = arith.mulf %1, %4 : vector<4x512xf32>
    %c0_4 = arith.constant 0 : index
    %c0_5 = arith.constant 0 : index
    %c0_6 = arith.constant 0 : index
    %6 = vector.load %arg2[%c0_4, %c0_5, %c0_6] : memref<9x4x4xf32, #tpu.memory_space<vmem>>, vector<1x4x4xf32>
    %7 = vector.shape_cast %6 : vector<1x4x4xf32> to vector<4x4xf32>
    %cst_7 = arith.constant dense<0.000000e+00> : vector<4x512xf32>
    %8 = tpu.matmul %7, %5, %cst_7 {dimension_numbers = #tpu.dot_dimension_numbers<[1], [0], [0], [1], [0, 0, 1, 1], [], []>} : vector<4x4xf32>, vector<4x512xf32>, vector<4x512xf32> -> vector<4x512xf32>
    %9 = arith.addf %0, %8 : vector<4x512xf32>
    %c0_8 = arith.constant 0 : index
    %c2 = arith.constant 2 : index
    %10 = vector.load %arg0[%c0_8, %c2] : memref<4x580xf32, #tpu.memory_space<vmem>>, vector<4x512xf32>
    %c1 = arith.constant 1 : index
    %c0_9 = arith.constant 0 : index
    %c0_10 = arith.constant 0 : index
    %11 = vector.load %arg2[%c1, %c0_9, %c0_10] : memref<9x4x4xf32, #tpu.memory_space<vmem>>, vector<1x4x4xf32>
    %12 = vector.shape_cast %11 : vector<1x4x4xf32> to vector<4x4xf32>
    %cst_11 = arith.constant dense<0.000000e+00> : vector<4x512xf32>
    %13 = tpu.matmul %12, %10, %cst_11 {dimension_numbers = #tpu.dot_dimension_numbers<[1], [0], [0], [1], [0, 0, 1, 1], [], []>} : vector<4x4xf32>, vector<4x512xf32>, vector<4x512xf32> -> vector<4x512xf32>
    %14 = arith.addf %9, %13 : vector<4x512xf32>
    %c0_12 = arith.constant 0 : index
    %c4 = arith.constant 4 : index
    %15 = vector.load %arg0[%c0_12, %c4] : memref<4x580xf32, #tpu.memory_space<vmem>>, vector<4x512xf32>
    %c2_13 = arith.constant 2 : index
    %c0_14 = arith.constant 0 : index
    %c0_15 = arith.constant 0 : index
    %16 = vector.load %arg1[%c2_13, %c0_14, %c0_15] : memref<9x1x512xf32, #tpu.memory_space<vmem>>, vector<1x1x512xf32>
    %17 = vector.shape_cast %16 : vector<1x1x512xf32> to vector<1x512xf32>
    %18 = vector.broadcast %17 : vector<1x512xf32> to vector<4x512xf32>
    %19 = arith.mulf %15, %18 : vector<4x512xf32>
    %c2_16 = arith.constant 2 : index
    %c0_17 = arith.constant 0 : index
    %c0_18 = arith.constant 0 : index
    %20 = vector.load %arg2[%c2_16, %c0_17, %c0_18] : memref<9x4x4xf32, #tpu.memory_space<vmem>>, vector<1x4x4xf32>
    %21 = vector.shape_cast %20 : vector<1x4x4xf32> to vector<4x4xf32>
    %cst_19 = arith.constant dense<0.000000e+00> : vector<4x512xf32>
    %22 = tpu.matmul %21, %19, %cst_19 {dimension_numbers = #tpu.dot_dimension_numbers<[1], [0], [0], [1], [0, 0, 1, 1], [], []>} : vector<4x4xf32>, vector<4x512xf32>, vector<4x512xf32> -> vector<4x512xf32>
    %23 = arith.addf %14, %22 : vector<4x512xf32>
    %c0_20 = arith.constant 0 : index
    %c32 = arith.constant 32 : index
    %24 = vector.load %arg0[%c0_20, %c32] : memref<4x580xf32, #tpu.memory_space<vmem>>, vector<4x512xf32>
    %c3 = arith.constant 3 : index
    %c0_21 = arith.constant 0 : index
    %c0_22 = arith.constant 0 : index
    %25 = vector.load %arg1[%c3, %c0_21, %c0_22] : memref<9x1x512xf32, #tpu.memory_space<vmem>>, vector<1x1x512xf32>
    %26 = vector.shape_cast %25 : vector<1x1x512xf32> to vector<1x512xf32>
    %27 = vector.broadcast %26 : vector<1x512xf32> to vector<4x512xf32>
    %28 = arith.mulf %24, %27 : vector<4x512xf32>
    %c3_23 = arith.constant 3 : index
    %c0_24 = arith.constant 0 : index
    %c0_25 = arith.constant 0 : index
    %29 = vector.load %arg2[%c3_23, %c0_24, %c0_25] : memref<9x4x4xf32, #tpu.memory_space<vmem>>, vector<1x4x4xf32>
    %30 = vector.shape_cast %29 : vector<1x4x4xf32> to vector<4x4xf32>
    %cst_26 = arith.constant dense<0.000000e+00> : vector<4x512xf32>
    %31 = tpu.matmul %30, %28, %cst_26 {dimension_numbers = #tpu.dot_dimension_numbers<[1], [0], [0], [1], [0, 0, 1, 1], [], []>} : vector<4x4xf32>, vector<4x512xf32>, vector<4x512xf32> -> vector<4x512xf32>
    %32 = arith.addf %23, %31 : vector<4x512xf32>
    %c0_27 = arith.constant 0 : index
    %c34 = arith.constant 34 : index
    %33 = vector.load %arg0[%c0_27, %c34] : memref<4x580xf32, #tpu.memory_space<vmem>>, vector<4x512xf32>
    %c4_28 = arith.constant 4 : index
    %c0_29 = arith.constant 0 : index
    %c0_30 = arith.constant 0 : index
    %34 = vector.load %arg2[%c4_28, %c0_29, %c0_30] : memref<9x4x4xf32, #tpu.memory_space<vmem>>, vector<1x4x4xf32>
    %35 = vector.shape_cast %34 : vector<1x4x4xf32> to vector<4x4xf32>
    %cst_31 = arith.constant dense<0.000000e+00> : vector<4x512xf32>
    %36 = tpu.matmul %35, %33, %cst_31 {dimension_numbers = #tpu.dot_dimension_numbers<[1], [0], [0], [1], [0, 0, 1, 1], [], []>} : vector<4x4xf32>, vector<4x512xf32>, vector<4x512xf32> -> vector<4x512xf32>
    %37 = arith.addf %32, %36 : vector<4x512xf32>
    %c0_32 = arith.constant 0 : index
    %c36 = arith.constant 36 : index
    %38 = vector.load %arg0[%c0_32, %c36] : memref<4x580xf32, #tpu.memory_space<vmem>>, vector<4x512xf32>
    %c5 = arith.constant 5 : index
    %c0_33 = arith.constant 0 : index
    %c0_34 = arith.constant 0 : index
    %39 = vector.load %arg1[%c5, %c0_33, %c0_34] : memref<9x1x512xf32, #tpu.memory_space<vmem>>, vector<1x1x512xf32>
    %40 = vector.shape_cast %39 : vector<1x1x512xf32> to vector<1x512xf32>
    %41 = vector.broadcast %40 : vector<1x512xf32> to vector<4x512xf32>
    %42 = arith.mulf %38, %41 : vector<4x512xf32>
    %c5_35 = arith.constant 5 : index
    %c0_36 = arith.constant 0 : index
    %c0_37 = arith.constant 0 : index
    %43 = vector.load %arg2[%c5_35, %c0_36, %c0_37] : memref<9x4x4xf32, #tpu.memory_space<vmem>>, vector<1x4x4xf32>
    %44 = vector.shape_cast %43 : vector<1x4x4xf32> to vector<4x4xf32>
    %cst_38 = arith.constant dense<0.000000e+00> : vector<4x512xf32>
    %45 = tpu.matmul %44, %42, %cst_38 {dimension_numbers = #tpu.dot_dimension_numbers<[1], [0], [0], [1], [0, 0, 1, 1], [], []>} : vector<4x4xf32>, vector<4x512xf32>, vector<4x512xf32> -> vector<4x512xf32>
    %46 = arith.addf %37, %45 : vector<4x512xf32>
    %c0_39 = arith.constant 0 : index
    %c64 = arith.constant 64 : index
    %47 = vector.load %arg0[%c0_39, %c64] : memref<4x580xf32, #tpu.memory_space<vmem>>, vector<4x512xf32>
    %c6 = arith.constant 6 : index
    %c0_40 = arith.constant 0 : index
    %c0_41 = arith.constant 0 : index
    %48 = vector.load %arg1[%c6, %c0_40, %c0_41] : memref<9x1x512xf32, #tpu.memory_space<vmem>>, vector<1x1x512xf32>
    %49 = vector.shape_cast %48 : vector<1x1x512xf32> to vector<1x512xf32>
    %50 = vector.broadcast %49 : vector<1x512xf32> to vector<4x512xf32>
    %51 = arith.mulf %47, %50 : vector<4x512xf32>
    %c6_42 = arith.constant 6 : index
    %c0_43 = arith.constant 0 : index
    %c0_44 = arith.constant 0 : index
    %52 = vector.load %arg2[%c6_42, %c0_43, %c0_44] : memref<9x4x4xf32, #tpu.memory_space<vmem>>, vector<1x4x4xf32>
    %53 = vector.shape_cast %52 : vector<1x4x4xf32> to vector<4x4xf32>
    %cst_45 = arith.constant dense<0.000000e+00> : vector<4x512xf32>
    %54 = tpu.matmul %53, %51, %cst_45 {dimension_numbers = #tpu.dot_dimension_numbers<[1], [0], [0], [1], [0, 0, 1, 1], [], []>} : vector<4x4xf32>, vector<4x512xf32>, vector<4x512xf32> -> vector<4x512xf32>
    %55 = arith.addf %46, %54 : vector<4x512xf32>
    %c0_46 = arith.constant 0 : index
    %c66 = arith.constant 66 : index
    %56 = vector.load %arg0[%c0_46, %c66] : memref<4x580xf32, #tpu.memory_space<vmem>>, vector<4x512xf32>
    %c7 = arith.constant 7 : index
    %c0_47 = arith.constant 0 : index
    %c0_48 = arith.constant 0 : index
    %57 = vector.load %arg2[%c7, %c0_47, %c0_48] : memref<9x4x4xf32, #tpu.memory_space<vmem>>, vector<1x4x4xf32>
    %58 = vector.shape_cast %57 : vector<1x4x4xf32> to vector<4x4xf32>
    %cst_49 = arith.constant dense<0.000000e+00> : vector<4x512xf32>
    %59 = tpu.matmul %58, %56, %cst_49 {dimension_numbers = #tpu.dot_dimension_numbers<[1], [0], [0], [1], [0, 0, 1, 1], [], []>} : vector<4x4xf32>, vector<4x512xf32>, vector<4x512xf32> -> vector<4x512xf32>
    %60 = arith.addf %55, %59 : vector<4x512xf32>
    %c0_50 = arith.constant 0 : index
    %c68 = arith.constant 68 : index
    %61 = vector.load %arg0[%c0_50, %c68] : memref<4x580xf32, #tpu.memory_space<vmem>>, vector<4x512xf32>
    %c8 = arith.constant 8 : index
    %c0_51 = arith.constant 0 : index
    %c0_52 = arith.constant 0 : index
    %62 = vector.load %arg1[%c8, %c0_51, %c0_52] : memref<9x1x512xf32, #tpu.memory_space<vmem>>, vector<1x1x512xf32>
    %63 = vector.shape_cast %62 : vector<1x1x512xf32> to vector<1x512xf32>
    %64 = vector.broadcast %63 : vector<1x512xf32> to vector<4x512xf32>
    %65 = arith.mulf %61, %64 : vector<4x512xf32>
    %c8_53 = arith.constant 8 : index
    %c0_54 = arith.constant 0 : index
    %c0_55 = arith.constant 0 : index
    %66 = vector.load %arg2[%c8_53, %c0_54, %c0_55] : memref<9x4x4xf32, #tpu.memory_space<vmem>>, vector<1x4x4xf32>
    %67 = vector.shape_cast %66 : vector<1x4x4xf32> to vector<4x4xf32>
    %cst_56 = arith.constant dense<0.000000e+00> : vector<4x512xf32>
    %68 = tpu.matmul %67, %65, %cst_56 {dimension_numbers = #tpu.dot_dimension_numbers<[1], [0], [0], [1], [0, 0, 1, 1], [], []>} : vector<4x4xf32>, vector<4x512xf32>, vector<4x512xf32> -> vector<4x512xf32>
    %69 = arith.addf %60, %68 : vector<4x512xf32>
    %c0_57 = arith.constant 0 : index
    %c0_58 = arith.constant 0 : index
    %70 = vector.load %arg3[%c0_57, %c0_58] : memref<4x1xf32, #tpu.memory_space<vmem>>, vector<4x1xf32>
    %71 = vector.broadcast %70 : vector<4x1xf32> to vector<4x512xf32>
    %72 = arith.addf %69, %71 : vector<4x512xf32>
    %cst_59 = arith.constant dense<0.000000e+00> : vector<4xf32>
    %73 = vector.multi_reduction <add>, %72, %cst_59 [1] : vector<4x512xf32> to vector<4xf32>
    %74 = vector.shape_cast %73 : vector<4xf32> to vector<4x1xf32>
    %cst_60 = arith.constant 0.001953125 : f32
    %75 = vector.broadcast %cst_60 : f32 to vector<4x1xf32>
    %76 = arith.mulf %74, %75 : vector<4x1xf32>
    %77 = vector.broadcast %76 : vector<4x1xf32> to vector<4x512xf32>
    %78 = arith.subf %72, %77 : vector<4x512xf32>
    %79 = arith.mulf %78, %78 : vector<4x512xf32>
    %cst_61 = arith.constant dense<0.000000e+00> : vector<4xf32>
    %80 = vector.multi_reduction <add>, %79, %cst_61 [1] : vector<4x512xf32> to vector<4xf32>
    %81 = vector.shape_cast %80 : vector<4xf32> to vector<4x1xf32>
    %cst_62 = arith.constant 0.001953125 : f32
    %82 = vector.broadcast %cst_62 : f32 to vector<4x1xf32>
    %83 = arith.mulf %81, %82 : vector<4x1xf32>
    %c0_63 = arith.constant 0 : index
    %c0_64 = arith.constant 0 : index
    %84 = vector.load %arg4[%c0_63, %c0_64] : memref<4x1xf32, #tpu.memory_space<vmem>>, vector<4x1xf32>
    %85 = vector.broadcast %84 : vector<4x1xf32> to vector<4x512xf32>
    %86 = arith.mulf %85, %78 : vector<4x512xf32>
    %cst_65 = arith.constant 9.99999974E-6 : f32
    %87 = vector.broadcast %cst_65 : f32 to vector<4x1xf32>
    %88 = arith.addf %83, %87 : vector<4x1xf32>
    %89 = math.rsqrt %88 : vector<4x1xf32>
    %90 = vector.broadcast %89 : vector<4x1xf32> to vector<4x512xf32>
    %91 = arith.mulf %86, %90 : vector<4x512xf32>
    %c0_66 = arith.constant 0 : index
    %c0_67 = arith.constant 0 : index
    %92 = vector.load %arg5[%c0_66, %c0_67] : memref<4x1xf32, #tpu.memory_space<vmem>>, vector<4x1xf32>
    %93 = vector.broadcast %92 : vector<4x1xf32> to vector<4x512xf32>
    %94 = arith.addf %91, %93 : vector<4x512xf32>
    %cst_68 = arith.constant 0.000000e+00 : f32
    %95 = vector.broadcast %cst_68 : f32 to vector<4x512xf32>
    %96 = arith.maximumf %94, %95 : vector<4x512xf32>
    %cst_69 = arith.constant 0.000000e+00 : f32
    %97 = vector.broadcast %cst_69 : f32 to vector<4x34xf32>
    %c0_70 = arith.constant 0 : index
    %c0_71 = arith.constant 0 : index
    %98 = vector.load %arg11[%c0_70, %c0_71] : memref<4x580xf32, #tpu.memory_space<vmem>>, vector<4x34xf32>
    tpu.vector_store %arg11[%c0_70, %c0_71], %97 {strides = array<i32>} : memref<4x580xf32, #tpu.memory_space<vmem>>, vector<4x34xf32>,
    %cst_72 = arith.constant 0.000000e+00 : f32
    %99 = vector.broadcast %cst_72 : f32 to vector<4x34xf32>
    %c0_73 = arith.constant 0 : index
    %c546 = arith.constant 546 : index
    %100 = vector.load %arg11[%c0_73, %c546] : memref<4x580xf32, #tpu.memory_space<vmem>>, vector<4x34xf32>
    tpu.vector_store %arg11[%c0_73, %c546], %99 {strides = array<i32>} : memref<4x580xf32, #tpu.memory_space<vmem>>, vector<4x34xf32>,
    %c0_74 = arith.constant 0 : index
    %c34_75 = arith.constant 34 : index
    %101 = vector.load %arg11[%c0_74, %c34_75] : memref<4x580xf32, #tpu.memory_space<vmem>>, vector<4x512xf32>
    tpu.vector_store %arg11[%c0_74, %c34_75], %96 {strides = array<i32>} : memref<4x580xf32, #tpu.memory_space<vmem>>, vector<4x512xf32>,
    %cst_76 = arith.constant 0.000000e+00 : f32
    %102 = vector.broadcast %cst_76 : f32 to vector<4x512xf32>
    %c0_77 = arith.constant 0 : index
    %c0_78 = arith.constant 0 : index
    %103 = vector.load %arg11[%c0_77, %c0_78] : memref<4x580xf32, #tpu.memory_space<vmem>>, vector<4x512xf32>
    %c0_79 = arith.constant 0 : index
    %c0_80 = arith.constant 0 : index
    %c0_81 = arith.constant 0 : index
    %104 = vector.load %arg1[%c0_79, %c0_80, %c0_81] : memref<9x1x512xf32, #tpu.memory_space<vmem>>, vector<1x1x512xf32>
    %105 = vector.shape_cast %104 : vector<1x1x512xf32> to vector<1x512xf32>
    %106 = vector.broadcast %105 : vector<1x512xf32> to vector<4x512xf32>
    %107 = arith.mulf %103, %106 : vector<4x512xf32>
    %c0_82 = arith.constant 0 : index
    %c0_83 = arith.constant 0 : index
    %c0_84 = arith.constant 0 : index
    %108 = vector.load %arg6[%c0_82, %c0_83, %c0_84] : memref<9x4x4xf32, #tpu.memory_space<vmem>>, vector<1x4x4xf32>
    %109 = vector.shape_cast %108 : vector<1x4x4xf32> to vector<4x4xf32>
    %cst_85 = arith.constant dense<0.000000e+00> : vector<4x512xf32>
    %110 = tpu.matmul %109, %107, %cst_85 {dimension_numbers = #tpu.dot_dimension_numbers<[1], [0], [0], [1], [0, 0, 1, 1], [], []>} : vector<4x4xf32>, vector<4x512xf32>, vector<4x512xf32> -> vector<4x512xf32>
    %111 = arith.addf %102, %110 : vector<4x512xf32>
    %c0_86 = arith.constant 0 : index
    %c2_87 = arith.constant 2 : index
    %112 = vector.load %arg11[%c0_86, %c2_87] : memref<4x580xf32, #tpu.memory_space<vmem>>, vector<4x512xf32>
    %c1_88 = arith.constant 1 : index
    %c0_89 = arith.constant 0 : index
    %c0_90 = arith.constant 0 : index
    %113 = vector.load %arg6[%c1_88, %c0_89, %c0_90] : memref<9x4x4xf32, #tpu.memory_space<vmem>>, vector<1x4x4xf32>
    %114 = vector.shape_cast %113 : vector<1x4x4xf32> to vector<4x4xf32>
    %cst_91 = arith.constant dense<0.000000e+00> : vector<4x512xf32>
    %115 = tpu.matmul %114, %112, %cst_91 {dimension_numbers = #tpu.dot_dimension_numbers<[1], [0], [0], [1], [0, 0, 1, 1], [], []>} : vector<4x4xf32>, vector<4x512xf32>, vector<4x512xf32> -> vector<4x512xf32>
    %116 = arith.addf %111, %115 : vector<4x512xf32>
    %c0_92 = arith.constant 0 : index
    %c4_93 = arith.constant 4 : index
    %117 = vector.load %arg11[%c0_92, %c4_93] : memref<4x580xf32, #tpu.memory_space<vmem>>, vector<4x512xf32>
    %c2_94 = arith.constant 2 : index
    %c0_95 = arith.constant 0 : index
    %c0_96 = arith.constant 0 : index
    %118 = vector.load %arg1[%c2_94, %c0_95, %c0_96] : memref<9x1x512xf32, #tpu.memory_space<vmem>>, vector<1x1x512xf32>
    %119 = vector.shape_cast %118 : vector<1x1x512xf32> to vector<1x512xf32>
    %120 = vector.broadcast %119 : vector<1x512xf32> to vector<4x512xf32>
    %121 = arith.mulf %117, %120 : vector<4x512xf32>
    %c2_97 = arith.constant 2 : index
    %c0_98 = arith.constant 0 : index
    %c0_99 = arith.constant 0 : index
    %122 = vector.load %arg6[%c2_97, %c0_98, %c0_99] : memref<9x4x4xf32, #tpu.memory_space<vmem>>, vector<1x4x4xf32>
    %123 = vector.shape_cast %122 : vector<1x4x4xf32> to vector<4x4xf32>
    %cst_100 = arith.constant dense<0.000000e+00> : vector<4x512xf32>
    %124 = tpu.matmul %123, %121, %cst_100 {dimension_numbers = #tpu.dot_dimension_numbers<[1], [0], [0], [1], [0, 0, 1, 1], [], []>} : vector<4x4xf32>, vector<4x512xf32>, vector<4x512xf32> -> vector<4x512xf32>
    %125 = arith.addf %116, %124 : vector<4x512xf32>
    %c0_101 = arith.constant 0 : index
    %c32_102 = arith.constant 32 : index
    %126 = vector.load %arg11[%c0_101, %c32_102] : memref<4x580xf32, #tpu.memory_space<vmem>>, vector<4x512xf32>
    %c3_103 = arith.constant 3 : index
    %c0_104 = arith.constant 0 : index
    %c0_105 = arith.constant 0 : index
    %127 = vector.load %arg1[%c3_103, %c0_104, %c0_105] : memref<9x1x512xf32, #tpu.memory_space<vmem>>, vector<1x1x512xf32>
    %128 = vector.shape_cast %127 : vector<1x1x512xf32> to vector<1x512xf32>
    %129 = vector.broadcast %128 : vector<1x512xf32> to vector<4x512xf32>
    %130 = arith.mulf %126, %129 : vector<4x512xf32>
    %c3_106 = arith.constant 3 : index
    %c0_107 = arith.constant 0 : index
    %c0_108 = arith.constant 0 : index
    %131 = vector.load %arg6[%c3_106, %c0_107, %c0_108] : memref<9x4x4xf32, #tpu.memory_space<vmem>>, vector<1x4x4xf32>
    %132 = vector.shape_cast %131 : vector<1x4x4xf32> to vector<4x4xf32>
    %cst_109 = arith.constant dense<0.000000e+00> : vector<4x512xf32>
    %133 = tpu.matmul %132, %130, %cst_109 {dimension_numbers = #tpu.dot_dimension_numbers<[1], [0], [0], [1], [0, 0, 1, 1], [], []>} : vector<4x4xf32>, vector<4x512xf32>, vector<4x512xf32> -> vector<4x512xf32>
    %134 = arith.addf %125, %133 : vector<4x512xf32>
    %c0_110 = arith.constant 0 : index
    %c34_111 = arith.constant 34 : index
    %135 = vector.load %arg11[%c0_110, %c34_111] : memref<4x580xf32, #tpu.memory_space<vmem>>, vector<4x512xf32>
    %c4_112 = arith.constant 4 : index
    %c0_113 = arith.constant 0 : index
    %c0_114 = arith.constant 0 : index
    %136 = vector.load %arg6[%c4_112, %c0_113, %c0_114] : memref<9x4x4xf32, #tpu.memory_space<vmem>>, vector<1x4x4xf32>
    %137 = vector.shape_cast %136 : vector<1x4x4xf32> to vector<4x4xf32>
    %cst_115 = arith.constant dense<0.000000e+00> : vector<4x512xf32>
    %138 = tpu.matmul %137, %135, %cst_115 {dimension_numbers = #tpu.dot_dimension_numbers<[1], [0], [0], [1], [0, 0, 1, 1], [], []>} : vector<4x4xf32>, vector<4x512xf32>, vector<4x512xf32> -> vector<4x512xf32>
    %139 = arith.addf %134, %138 : vector<4x512xf32>
    %c0_116 = arith.constant 0 : index
    %c36_117 = arith.constant 36 : index
    %140 = vector.load %arg11[%c0_116, %c36_117] : memref<4x580xf32, #tpu.memory_space<vmem>>, vector<4x512xf32>
    %c5_118 = arith.constant 5 : index
    %c0_119 = arith.constant 0 : index
    %c0_120 = arith.constant 0 : index
    %141 = vector.load %arg1[%c5_118, %c0_119, %c0_120] : memref<9x1x512xf32, #tpu.memory_space<vmem>>, vector<1x1x512xf32>
    %142 = vector.shape_cast %141 : vector<1x1x512xf32> to vector<1x512xf32>
    %143 = vector.broadcast %142 : vector<1x512xf32> to vector<4x512xf32>
    %144 = arith.mulf %140, %143 : vector<4x512xf32>
    %c5_121 = arith.constant 5 : index
    %c0_122 = arith.constant 0 : index
    %c0_123 = arith.constant 0 : index
    %145 = vector.load %arg6[%c5_121, %c0_122, %c0_123] : memref<9x4x4xf32, #tpu.memory_space<vmem>>, vector<1x4x4xf32>
    %146 = vector.shape_cast %145 : vector<1x4x4xf32> to vector<4x4xf32>
    %cst_124 = arith.constant dense<0.000000e+00> : vector<4x512xf32>
    %147 = tpu.matmul %146, %144, %cst_124 {dimension_numbers = #tpu.dot_dimension_numbers<[1], [0], [0], [1], [0, 0, 1, 1], [], []>} : vector<4x4xf32>, vector<4x512xf32>, vector<4x512xf32> -> vector<4x512xf32>
    %148 = arith.addf %139, %147 : vector<4x512xf32>
    %c0_125 = arith.constant 0 : index
    %c64_126 = arith.constant 64 : index
    %149 = vector.load %arg11[%c0_125, %c64_126] : memref<4x580xf32, #tpu.memory_space<vmem>>, vector<4x512xf32>
    %c6_127 = arith.constant 6 : index
    %c0_128 = arith.constant 0 : index
    %c0_129 = arith.constant 0 : index
    %150 = vector.load %arg1[%c6_127, %c0_128, %c0_129] : memref<9x1x512xf32, #tpu.memory_space<vmem>>, vector<1x1x512xf32>
    %151 = vector.shape_cast %150 : vector<1x1x512xf32> to vector<1x512xf32>
    %152 = vector.broadcast %151 : vector<1x512xf32> to vector<4x512xf32>
    %153 = arith.mulf %149, %152 : vector<4x512xf32>
    %c6_130 = arith.constant 6 : index
    %c0_131 = arith.constant 0 : index
    %c0_132 = arith.constant 0 : index
    %154 = vector.load %arg6[%c6_130, %c0_131, %c0_132] : memref<9x4x4xf32, #tpu.memory_space<vmem>>, vector<1x4x4xf32>
    %155 = vector.shape_cast %154 : vector<1x4x4xf32> to vector<4x4xf32>
    %cst_133 = arith.constant dense<0.000000e+00> : vector<4x512xf32>
    %156 = tpu.matmul %155, %153, %cst_133 {dimension_numbers = #tpu.dot_dimension_numbers<[1], [0], [0], [1], [0, 0, 1, 1], [], []>} : vector<4x4xf32>, vector<4x512xf32>, vector<4x512xf32> -> vector<4x512xf32>
    %157 = arith.addf %148, %156 : vector<4x512xf32>
    %c0_134 = arith.constant 0 : index
    %c66_135 = arith.constant 66 : index
    %158 = vector.load %arg11[%c0_134, %c66_135] : memref<4x580xf32, #tpu.memory_space<vmem>>, vector<4x512xf32>
    %c7_136 = arith.constant 7 : index
    %c0_137 = arith.constant 0 : index
    %c0_138 = arith.constant 0 : index
    %159 = vector.load %arg6[%c7_136, %c0_137, %c0_138] : memref<9x4x4xf32, #tpu.memory_space<vmem>>, vector<1x4x4xf32>
    %160 = vector.shape_cast %159 : vector<1x4x4xf32> to vector<4x4xf32>
    %cst_139 = arith.constant dense<0.000000e+00> : vector<4x512xf32>
    %161 = tpu.matmul %160, %158, %cst_139 {dimension_numbers = #tpu.dot_dimension_numbers<[1], [0], [0], [1], [0, 0, 1, 1], [], []>} : vector<4x4xf32>, vector<4x512xf32>, vector<4x512xf32> -> vector<4x512xf32>
    %162 = arith.addf %157, %161 : vector<4x512xf32>
    %c0_140 = arith.constant 0 : index
    %c68_141 = arith.constant 68 : index
    %163 = vector.load %arg11[%c0_140, %c68_141] : memref<4x580xf32, #tpu.memory_space<vmem>>, vector<4x512xf32>
    %c8_142 = arith.constant 8 : index
    %c0_143 = arith.constant 0 : index
    %c0_144 = arith.constant 0 : index
    %164 = vector.load %arg1[%c8_142, %c0_143, %c0_144] : memref<9x1x512xf32, #tpu.memory_space<vmem>>, vector<1x1x512xf32>
    %165 = vector.shape_cast %164 : vector<1x1x512xf32> to vector<1x512xf32>
    %166 = vector.broadcast %165 : vector<1x512xf32> to vector<4x512xf32>
    %167 = arith.mulf %163, %166 : vector<4x512xf32>
    %c8_145 = arith.constant 8 : index
    %c0_146 = arith.constant 0 : index
    %c0_147 = arith.constant 0 : index
    %168 = vector.load %arg6[%c8_145, %c0_146, %c0_147] : memref<9x4x4xf32, #tpu.memory_space<vmem>>, vector<1x4x4xf32>
    %169 = vector.shape_cast %168 : vector<1x4x4xf32> to vector<4x4xf32>
    %cst_148 = arith.constant dense<0.000000e+00> : vector<4x512xf32>
    %170 = tpu.matmul %169, %167, %cst_148 {dimension_numbers = #tpu.dot_dimension_numbers<[1], [0], [0], [1], [0, 0, 1, 1], [], []>} : vector<4x4xf32>, vector<4x512xf32>, vector<4x512xf32> -> vector<4x512xf32>
    %171 = arith.addf %162, %170 : vector<4x512xf32>
    %c0_149 = arith.constant 0 : index
    %c0_150 = arith.constant 0 : index
    %172 = vector.load %arg7[%c0_149, %c0_150] : memref<4x1xf32, #tpu.memory_space<vmem>>, vector<4x1xf32>
    %173 = vector.broadcast %172 : vector<4x1xf32> to vector<4x512xf32>
    %174 = arith.addf %171, %173 : vector<4x512xf32>
    %cst_151 = arith.constant dense<0.000000e+00> : vector<4xf32>
    %175 = vector.multi_reduction <add>, %174, %cst_151 [1] : vector<4x512xf32> to vector<4xf32>
    %176 = vector.shape_cast %175 : vector<4xf32> to vector<4x1xf32>
    %cst_152 = arith.constant 0.001953125 : f32
    %177 = vector.broadcast %cst_152 : f32 to vector<4x1xf32>
    %178 = arith.mulf %176, %177 : vector<4x1xf32>
    %179 = vector.broadcast %178 : vector<4x1xf32> to vector<4x512xf32>
    %180 = arith.subf %174, %179 : vector<4x512xf32>
    %181 = arith.mulf %180, %180 : vector<4x512xf32>
    %cst_153 = arith.constant dense<0.000000e+00> : vector<4xf32>
    %182 = vector.multi_reduction <add>, %181, %cst_153 [1] : vector<4x512xf32> to vector<4xf32>
    %183 = vector.shape_cast %182 : vector<4xf32> to vector<4x1xf32>
    %cst_154 = arith.constant 0.001953125 : f32
    %184 = vector.broadcast %cst_154 : f32 to vector<4x1xf32>
    %185 = arith.mulf %183, %184 : vector<4x1xf32>
    %c0_155 = arith.constant 0 : index
    %c34_156 = arith.constant 34 : index
    %186 = vector.load %arg0[%c0_155, %c34_156] : memref<4x580xf32, #tpu.memory_space<vmem>>, vector<4x512xf32>
    %c0_157 = arith.constant 0 : index
    %c0_158 = arith.constant 0 : index
    %187 = vector.load %arg8[%c0_157, %c0_158] : memref<4x1xf32, #tpu.memory_space<vmem>>, vector<4x1xf32>
    %188 = vector.broadcast %187 : vector<4x1xf32> to vector<4x512xf32>
    %189 = arith.mulf %188, %180 : vector<4x512xf32>
    %cst_159 = arith.constant 9.99999974E-6 : f32
    %190 = vector.broadcast %cst_159 : f32 to vector<4x1xf32>
    %191 = arith.addf %185, %190 : vector<4x1xf32>
    %192 = math.rsqrt %191 : vector<4x1xf32>
    %193 = vector.broadcast %192 : vector<4x1xf32> to vector<4x512xf32>
    %194 = arith.mulf %189, %193 : vector<4x512xf32>
    %c0_160 = arith.constant 0 : index
    %c0_161 = arith.constant 0 : index
    %195 = vector.load %arg9[%c0_160, %c0_161] : memref<4x1xf32, #tpu.memory_space<vmem>>, vector<4x1xf32>
    %196 = vector.broadcast %195 : vector<4x1xf32> to vector<4x512xf32>
    %197 = arith.addf %194, %196 : vector<4x512xf32>
    %198 = arith.addf %197, %186 : vector<4x512xf32>
    %cst_162 = arith.constant 0.000000e+00 : f32
    %199 = vector.broadcast %cst_162 : f32 to vector<4x512xf32>
    %200 = arith.maximumf %198, %199 : vector<4x512xf32>
    %c0_163 = arith.constant 0 : index
    %c0_164 = arith.constant 0 : index
    %201 = vector.load %arg10[%c0_163, %c0_164] : memref<4x512xf32, #tpu.memory_space<vmem>>, vector<4x512xf32>
    tpu.vector_store %arg10[%c0_163, %c0_164], %200 {strides = array<i32>} : memref<4x512xf32, #tpu.memory_space<vmem>>, vector<4x512xf32>,
    return
  }
}

</mosaic_0001>

<bundles_post_ra>
// kernel: tpu_custom_call.1
= control target key start
LH: loop header
LB: loop body
LE: loop exit
PB: predicated region body
PF: predicated region fallthrough
CT: control target
= control target key end

     0   :  { %v40_v0 = vlaneseq  ;;  %s4866_s0 = inlined_call_operand.vmem [shape: f32[4,580], index: 0, kind: input, shape index: {}]   ;;  %s4867_s1 = inlined_call_operand.vmem [shape: f32[9,1,512], index: 1, kind: input, shape index: {}]   ;;  %s4868_s2 = inlined_call_operand.vmem [shape: f32[9,4,4], index: 2, kind: input, shape index: {}]   ;;  %s4869_s3 = inlined_call_operand.vmem [shape: f32[4,1], index: 3, kind: input, shape index: {}]   ;;  %s4870_s4 = inlined_call_operand.vmem [shape: f32[4,1], index: 4, kind: input, shape index: {}]   ;;  %s4871_s5 = inlined_call_operand.vmem [shape: f32[4,1], index: 5, kind: input, shape index: {}]   ;;  %s4872_s6 = inlined_call_operand.vmem [shape: f32[9,4,4], index: 6, kind: input, shape index: {}]   ;;  %s4873_s7 = inlined_call_operand.vmem [shape: f32[4,1], index: 7, kind: input, shape index: {}]   ;;  %s4874_s8 = inlined_call_operand.vmem [shape: f32[4,1], index: 8, kind: input, shape index: {}]   ;;  %s4875_s9 = inlined_call_operand.vmem [shape: f32[4,1], index: 9, kind: input, shape index: {}]   ;;  %s4876_s10 = inlined_call_operand.hbm [shape: f32[4,512], index: 10, kind: output, shape index: {}]  }
   0x1   :  { %v3896_v2 = vld [vmem:[%s4867_s1 + $0xc] sm:$0xf]  ;;  %v3888_v3 = vld [vmem:[%s4867_s1 + $0x8] sm:$0xf]  ;;  %v3911_v12 = vld [vmem:[%s4867_s1 + $0x14] sm:$0xf] }
   0x2   :  { %v41_v1 = vshrl.u32 %v40_v0, 7 }
   0x4   :  { %v4134_v4 = vsub.s32 0, %v41_v1  ;;  %v4136_v5 = vsub.s32 1, %v41_v1  ;;  %v4138_v6 = vsub.s32 2, %v41_v1  ;;  %v4140_v7 = vsub.s32 3, %v41_v1 }
   0x6   :  { %v625_v8 = vrot.slane %v3896_v2, %v4134_v4  ;;  %v629_v9 = vrot.slane %v3896_v2, %v4136_v5  ;;  %v407_v10 = vrot.slane %v3888_v3, %v4134_v4  ;;  %v411_v11 = vrot.slane %v3888_v3, %v4136_v5 }
   0x7   :  { %15 = vsyncpa [#allocation4], 0  ;;  %v633_v13 = vrot.slane %v3896_v2, %v4138_v6  ;;  %v637_v14 = vrot.slane %v3896_v2, %v4140_v7  ;;  %v415_v15 = vrot.slane %v3888_v3, %v4138_v6  ;;  %v419_v16 = vrot.slane %v3888_v3, %v4140_v7  ;;  %s4057_s19 = smov 32   ;;  %s4058_s20 = smov 4   ;;  %v3919_v25 = vld [vmem:[%s4867_s1 + $0x18] sm:$0xf] }
   0x8   :  { %v638_v17 = vcombine.low %v625_v8, %v629_v9  ;;  %v420_v18 = vcombine.low %v407_v10, %v411_v11  ;;  %v1034_v20 = vrot.slane %v3911_v12, %v4138_v6  ;;  %v1038_v21 = vrot.slane %v3911_v12, %v4140_v7  ;;  %v3934_v32 = vld [vmem:[%s4867_s1 + $0x20] sm:$0xf]  ;;  %s4059_s25 = smov 36   ;;  %s4060_s26 = smov 64   ;;  %v4193_v43 = vld [vmem:[%s4866_s0 + $0x8] sm:$0xff] }
   0x9   :  { %v639_v19 = vcombine.low %v633_v13, %v637_v14  ;;  %v421_v22 = vcombine.low %v415_v15, %v419_v16  ;;  %v1026_v23 = vrot.slane %v3911_v12, %v4134_v4  ;;  %v1030_v24 = vrot.slane %v3911_v12, %v4136_v5  ;;  %v4182_v41 = vld [vmem:[%s4866_s0] sm:$0xff]  ;;  %s4061_s29 = smov 68   ;;  %s4062_s12 = smov 126   ;;  %v63_v45 = vld [vmem:[%s4866_s0 + $0x10] sm:$0xf] }
   0xa   :  { %640 = vrot.lane.b32.xlu1 %v638_v17, %s4057_s19  ;;  %422 = vrot.lane.b32.xlu0 %v420_v18, %s4058_s20  ;;  %v1040_v26 = vcombine.low %v1034_v20, %v1038_v21  ;;  %v1253_v27 = vrot.slane %v3919_v25, %v4138_v6  ;;  %v1257_v28 = vrot.slane %v3919_v25, %v4140_v7  ;;  %s4063_s15 = smov 94   ;;  %v837_v46 = vld [vmem:[%s4866_s0 + $0x10] sm:$0xf]  ;;  %v38_v57 = vld [vmem:[%s4867_s1] sm:$0xf]  ;;  %vm646_vm0 = vcmask 261120  }
   0xb   :  { %v1039_v29 = vcombine.low %v1026_v23, %v1030_v24  ;;  %v1245_v30 = vrot.slane %v3919_v25, %v4134_v4  ;;  %v1249_v31 = vrot.slane %v3919_v25, %v4136_v5  ;;  %v1645_v34 = vrot.slane %v3934_v32, %v4134_v4  ;;  %v618_v51 = vld [vmem:[%s4866_s0 + $0x10] sm:$0xf]  ;;  %s4064_s11 = smov 96   ;;  %s4065_s13 = smov 124  }
   0xc   :  { %v1259_v33 = vcombine.low %v1253_v27, %v1257_v28  ;;  %v1649_v35 = vrot.slane %v3934_v32, %v4136_v5  ;;  %v1653_v37 = vrot.slane %v3934_v32, %v4138_v6  ;;  %v1657_v38 = vrot.slane %v3934_v32, %v4140_v7  ;;  %v400_v52 = vld [vmem:[%s4866_s0 + $0x10] sm:$0xf]  ;;  %s4066_s17 = smov 92   ;;  %s4068_s24 = smov 62  }
   0xd   :  { %v1258_v36 = vcombine.low %v1245_v30, %v1249_v31  ;;  %v4188_v42 = vcombine.high %v4182_v41, %v4182_v41  ;;  %v4201_v44 = vcombine.high %v4193_v43, %v4193_v43  ;;  %v1019_v61 = vld [vmem:[%s4866_s0 + $0x10] sm:$0xf]  ;;  %v43_v63 = vrot.slane %v38_v57, %v4134_v4  ;;  %s4070_s30 = smov 60  }
   0xe   :  { %642 = vrot.lane.b32.xlu1 %v639_v19, %s4057_s19  ;;  %424 = vrot.lane.b32.xlu0 %v421_v22, %s4058_s20  ;;  %v1658_v39 = vcombine.low %v1645_v34, %v1649_v35  ;;  %v1659_v40 = vcombine.low %v1653_v37, %v1657_v38  ;;  %v47_v0 = vrot.slane %v38_v57, %v4136_v5  ;;  %v1238_v10 = vld [vmem:[%s4866_s0 + $0x10] sm:$0xf]  ;;  %vm86_vm1 = vcmask 31744  }
   0xf   :  { %vm90_vm2 = vcmask 1043456   ;;  %vm1047_vm3 = vcmask 293888   ;;  %v51_v14 = vrot.slane %v38_v57, %v4138_v6  ;;  %v55_v17 = vrot.slane %v38_v57, %v4140_v7  ;;  %v62_v57 = vld [vmem:[%s4868_s2] sm:$0xf] }
  0x10   :  { %v56_v13 = vcombine.low %v43_v63, %v47_v0  ;;  %vm81_vm4 = vcmask 1031168   ;;  %v4067_v24 = vmov 0.0   ;;  %vm1266_vm5 = vcmask 523264  }
  0x11   :  { %163 = vmatprep.mubr.f32.mxu0 %v4067_v24  ;;  %234 = vmatprep.mubr.f32.mxu1 %v4067_v24  ;;  %v57_v28 = vcombine.low %v51_v14, %v55_v17  ;;  %vm1666_vm6 = vcmask 556032   ;;  %vm454_vm7 = vcmask 1014784   ;;  %vm673_vm8 = vcmask 785408  }
  0x12   :  { %1043 = vrot.lane.b32.xlu1 %v1040_v26, %s4059_s25  ;;  %1041 = vrot.lane.b32.xlu0 %v1039_v29, %s4059_s25  ;;  %v60_v25 = vmul.f32 %v56_v13, %v4182_v41  ;;  %vm855_vm9 = vcmask 769024   ;;  %vm1074_vm10 = vcmask 752640   ;;  %vm4878_vm11 = vcmask 506880  }
  0x13   :  { %vm4877_vm12 = vcmask 490496   ;;  %vm1923_vm13 = vcmask 273408   ;;  %vm1925_vm14 = vcmask 552208   ;;  %vm1946_vm15 = vcmask 1043728  }
  0x14   :  { %v243_v38 = vcombine.high %v60_v25, %v60_v25  ;;  %1924 = vst.msk [vmem:[#allocation2] sm:$0xf] %vm1923_vm13, %v4067_v24 }
  0x15   :  { %1926 = vst.msk [vmem:[#allocation2 + $0x10] sm:$0xf] %vm1925_vm14, %v4067_v24  ;;  %vm1947_vm14 = vcmask 1047556  }
  0x16   :  { %1262 = vrot.lane.b32.xlu1 %v1259_v33, %s4060_s26  ;;  %1260 = vrot.lane.b32.xlu0 %v1258_v36, %s4060_s26 }
  0x1a   :  { %1660 = vrot.lane.b32.xlu0 %v1658_v39, %s4061_s29  ;;  %1662 = vrot.lane.b32.xlu1 %v1659_v40, %s4061_s29  ;;  %v61_v39 = vmul.f32 %v57_v28, %v4193_v43 }
  0x1e   :  { %73 = vrot.lane.b32.xlu0 %v4188_v42, %s4062_s12  ;;  %75 = vrot.lane.b32.xlu1 %v4193_v43, %s4062_s12 }
  0x22   :  { %71 = vrot.lane.b32.xlu0 %v4182_v41, %s4062_s12  ;;  %77 = vrot.lane.b32.xlu1 %v4201_v44, %s4062_s12 }
  0x26   :  { %79 = vrot.lane.b32.xlu0 %v63_v45, %s4062_s12  ;;  %847 = vrot.lane.b32.xlu1 %v4188_v42, %s4063_s15 }
  0x2a   :  { %845 = vrot.lane.b32.xlu1 %v4182_v41, %s4063_s15  ;;  %849 = vrot.lane.b32.xlu0 %v4193_v43, %s4063_s15 }
  0x2e   :  { %851 = vrot.lane.b32.xlu0 %v4201_v44, %s4063_s15  ;;  %853 = vrot.lane.b32.xlu1 %v837_v46, %s4063_s15 }
  0x7c   :  { %v4223_v47 = vpop.permute.xlu1 %640  ;;  %v423_v48 = vpop.permute.xlu0 %422 }
  0x7d   :  { %v644_v58 = vrot.slane %v4223_v47, 4  ;;  %v426_v3 = vrot.slane %v423_v48, 4 }
  0x7f   :  { %v647_v2 = vsel %vm646_vm0, %v644_v58, %v4223_v47  ;;  %v428_v18 = vsel %vm86_vm1, %v426_v3, %v423_v48  ;;  %v3875_v47 = vld [vmem:[%s4868_s2 + $0x4] sm:$0xf] }
  0x80   :  { %v4225_v49 = vpop.permute.xlu1 %642  ;;  %v425_v50 = vpop.permute.xlu0 %424  ;;  %v4261_v16 = vmul.f32 %v647_v2, %v4182_v41  ;;  %v434_v26 = vmul.f32 %v428_v18, %v4182_v41 }
  0x81   :  { %v645_v53 = vrot.slane %v4225_v49, 4  ;;  %v427_v54 = vrot.slane %v425_v50, 4 }
  0x83   :  { %v655_v55 = vmul.f32 %v645_v53, %v618_v51  ;;  %v436_v56 = vmul.f32 %v427_v54, %v400_v52  ;;  %v429_v22 = vsel %vm90_vm2, %v426_v3, %v427_v54  ;;  %v648_v33 = vsel %vm90_vm2, %v644_v58, %v645_v53 }
  0x84   :  { %v4238_v59 = vpop.permute.xlu1 %1043  ;;  %v4240_v60 = vpop.permute.xlu0 %1041  ;;  %v430_v29 = vsel %vm86_vm1, %v429_v22, %v425_v50  ;;  %v649_v40 = vsel %vm646_vm0, %v648_v33, %v4225_v49  ;;  %v244_v53 = vcombine.high %v61_v39, %v61_v39 }
  0x85   :  { %v1046_v62 = vrot.slane %v4238_v59, 4  ;;  %671 = vrot.lane.b32.xlu0 %v655_v55, %s4064_s11  ;;  %452 = vrot.lane.b32.xlu1 %v436_v56, %s4065_s13  ;;  %v1045_v12 = vrot.slane %v4240_v60, 4  ;;  %v435_v37 = vmul.f32 %v430_v29, %v4193_v43  ;;  %v654_v49 = vmul.f32 %v649_v40, %v4193_v43 }
  0x87   :  { %v1056_v1 = vmul.f32 %v1046_v62, %v1019_v61  ;;  %v1048_v19 = vsel %vm1047_vm3, %v1045_v12, %v4240_v60  ;;  %v1049_v48 = vsel %vm90_vm2, %v1045_v12, %v1046_v62  ;;  %v661_v60 = vcombine.high %v4261_v16, %v4261_v16 }
  0x88   :  { %v1263_v8 = vpop.permute.xlu1 %1262  ;;  %v1261_v9 = vpop.permute.xlu0 %1260  ;;  %v1054_v27 = vmul.f32 %v1048_v19, %v4182_v41  ;;  %v1050_v54 = vsel %vm1047_vm3, %v1049_v48, %v4238_v59  ;;  %v442_v61 = vcombine.high %v434_v26, %v434_v26  ;;  %v443_v0 = vcombine.high %v435_v37, %v435_v37 }
  0x89   :  { %v1265_v11 = vrot.slane %v1263_v8, 4  ;;  %1072 = vrot.lane.b32.xlu0 %v1056_v1, %s4066_s17  ;;  %v1264_v23 = vrot.slane %v1261_v9, 4  ;;  %v1055_v59 = vmul.f32 %v1050_v54, %v4193_v43  ;;  %v662_v1 = vcombine.high %v654_v49, %v654_v49 }
  0x8a   :  { %v1062_v62 = vcombine.high %v1054_v27, %v1054_v27 }
  0x8b   :  { %v1275_v15 = vmul.f32 %v1265_v11, %v1238_v10  ;;  %v1267_v30 = vsel %vm1266_vm5, %v1264_v23, %v1261_v9  ;;  %v1268_v34 = vsel %vm90_vm2, %v1264_v23, %v1265_v11  ;;  %v1063_v12 = vcombine.high %v1055_v59, %v1055_v59 }
  0x8c   :  { %v4267_v20 = vpop.permute.xlu0 %1660  ;;  %v4269_v21 = vpop.permute.xlu1 %1662  ;;  %v1273_v36 = vmul.f32 %v1267_v30, %v4182_v41  ;;  %v1269_v45 = vsel %vm1266_vm5, %v1268_v34, %v1263_v8  ;;  %v1456_v8 = vld [vmem:[%s4866_s0 + $0x10] sm:$0xf] }
  0x8d   :  { %1291 = vrot.lane.b32.xlu1 %v1275_v15, %s4060_s26  ;;  %663 = vrot.lane.b32.xlu0 %v4261_v16, %s4064_s11  ;;  %v1274_v52 = vmul.f32 %v1269_v45, %v4193_v43  ;;  %v1665_v2 = vrot.slane %v4269_v21, 4  ;;  %v1664_v3 = vrot.slane %v4267_v20, 4  ;;  %v4069_v16 = vmov 0   ;;  %v3889_v45 = vld [vmem:[%s4868_s2 + $0x8] sm:$0xf] }
  0x8e   :  { %v1281_v63 = vcombine.high %v1273_v36, %v1273_v36  ;;  %4025 = vset.pattern.permute.xlu0 %v4069_v16  ;;  %4026 = vset.pattern.permute.xlu1 %v4069_v16 }
  0x8f   :  { %v1668_v9 = vsel %vm90_vm2, %v1664_v3, %v1665_v2  ;;  %v1282_v13 = vcombine.high %v1274_v52, %v1274_v52 }
  0x90   :  { %v74_v31 = vpop.permute.xlu0 %73  ;;  %v76_v32 = vpop.permute.xlu1 %75  ;;  %v1669_v10 = vsel %vm1666_vm6, %v1668_v9, %v4269_v21 }
  0x91   :  { %444 = vrot.lane.b32.xlu1 %v434_v26, %s4065_s13  ;;  %1064 = vrot.lane.b32.xlu0 %v1054_v27, %s4066_s17  ;;  %v83_v35 = vsel %vm81_vm4, %v74_v31, %v76_v32  ;;  %v1674_v14 = vmul.f32 %v1669_v10, %v4193_v43 }
  0x92   :  { %3876 = vmatprep.subr.msk.mxu0 %vm90_vm2, %v83_v35 }
  0x94   :  { %v72_v46 = vpop.permute.xlu0 %71  ;;  %v78_v50 = vpop.permute.xlu1 %77 }
  0x95   :  { %1283 = vrot.lane.b32.xlu1 %v1273_v36, %s4060_s26  ;;  %448 = vrot.lane.b32.xlu0 %v435_v37, %s4065_s13  ;;  %v82_v51 = vsel %vm81_vm4, %v72_v46, %v74_v31  ;;  %v84_v56 = vsel %vm81_vm4, %v76_v32, %v78_v50 }
  0x96   :  { %3877 = vmatpush1.msk.msra.mxu0 %vm90_vm2, %v82_v51 }
  0x97   :  { %3878 = vmatmul.mubr.msk.f32.vlgmr.msra.gmra.mxu0 %vm86_vm1, %v3875_v47  ;;  %3882 = vmatprep.subr.msk.mxu0 %vm90_vm2, %v243_v38 }
  0x98   :  { %v80_v55 = vpop.permute.xlu0 %79  ;;  %3883 = vmatpush1.msk.msra.mxu0 %vm90_vm2, %v60_v25  ;;  %320 = vmatprep.mubr.f32.mxu0 %v4067_v24  ;;  %v848_v18 = vpop.permute.xlu1 %847 }
  0x99   :  { %667 = vrot.lane.b32.xlu1 %v654_v49, %s4064_s11  ;;  %1287 = vrot.lane.b32.xlu0 %v1274_v52, %s4060_s26  ;;  %v85_v58 = vsel %vm81_vm4, %v78_v50, %v80_v55 }
  0x9a   :  { %3879 = vmatprep.subr.msk.mxu1 %vm90_vm2, %v85_v58  ;;  %v3904_v58 = vld [vmem:[%s4868_s2 + $0x10] sm:$0xf] }
  0x9b   :  { %3880 = vmatpush1.msk.msra.mxu1 %vm90_vm2, %v84_v56  ;;  %3884 = vmatmul.mubr.msk.f32.vlgmr.msra.gmra.mxu0 %vm86_vm1, %v62_v57 }
  0x9c   :  { %3881 = vmatmul.mubr.msk.f32.vlgmr.msra.gmra.mxu1 %vm86_vm1, %v3875_v47  ;;  %3885 = vmatprep.subr.msk.mxu1 %vm90_vm2, %v244_v53  ;;  %v4373_v19 = vpop.permute.xlu0 %849  ;;  %v3897_v53 = vld [vmem:[%s4868_s2 + $0xc] sm:$0xf] }
  0x9d   :  { %1068 = vrot.lane.b32.xlu1 %v1055_v59, %s4066_s17  ;;  %665 = vrot.lane.b32.xlu0 %v661_v60, %s4064_s11  ;;  %v857_v52 = vsel %vm855_vm9, %v848_v18, %v4373_v19 }
  0x9e   :  { %3886 = vmatpush1.msk.msra.mxu1 %vm90_vm2, %v61_v39  ;;  %391 = vmatprep.mubr.f32.mxu1 %v4067_v24 }
  0x9f   :  { %534 = vmatprep.mubr.f32.mxu0 %v4067_v24 }
  0xa0   :  { %3887 = vmatmul.mubr.msk.f32.vlgmr.msra.gmra.mxu1 %vm86_vm1, %v62_v57  ;;  %v4375_v21 = vpop.permute.xlu0 %851 }
  0xa1   :  { %446 = vrot.lane.b32.xlu1 %v442_v61, %s4065_s13  ;;  %1066 = vrot.lane.b32.xlu0 %v1062_v62, %s4066_s17 }
  0xa2   :  { %605 = vmatprep.mubr.f32.mxu1 %v4067_v24 }
  0xa5   :  { %1285 = vrot.lane.b32.xlu1 %v1281_v63, %s4060_s26  ;;  %450 = vrot.lane.b32.xlu0 %v443_v0, %s4065_s13 }
  0xa9   :  { %1468 = vrot.lane.b32.xlu1 %v4193_v43, %s4068_s24  ;;  %1466 = vrot.lane.b32.xlu0 %v4188_v42, %s4068_s24  ;;  %v1667_v42 = vsel %vm1666_vm6, %v1664_v3, %v4267_v20  ;;  %v1855_v43 = vld [vmem:[%s4869_s3] sm:$0xf]  ;;  %v846_v20 = vpop.permute.xlu1 %845  ;;  %v858_v3 = vsel %vm855_vm9, %v4373_v19, %v4375_v21 }
  0xaa   :  { %v1673_v11 = vmul.f32 %v1667_v42, %v4182_v41  ;;  %v856_v54 = vsel %vm855_vm9, %v846_v20, %v848_v18 }
  0xac   :  { %v1681_v15 = vcombine.high %v1673_v11, %v1673_v11 }
  0xad   :  { %669 = vrot.lane.b32.xlu1 %v662_v1, %s4064_s11  ;;  %1464 = vrot.lane.b32.xlu0 %v4182_v41, %s4068_s24  ;;  %v1638_v41 = vld [vmem:[%s4866_s0 + $0x10] sm:$0xf]  ;;  %v4377_v22 = vpop.permute.xlu1 %853  ;;  %v3912_v1 = vld [vmem:[%s4868_s2 + $0x14] sm:$0xf] }
  0xae   :  { %v1675_v17 = vmul.f32 %v1665_v2, %v1638_v41  ;;  %v859_v2 = vsel %vm855_vm9, %v4375_v21, %v4377_v22 }
  0xb1   :  { %1470 = vrot.lane.b32.xlu1 %v4201_v44, %s4068_s24  ;;  %1472 = vrot.lane.b32.xlu0 %v1456_v8, %s4068_s24  ;;  %v1682_v44 = vcombine.high %v1674_v14, %v1674_v14 }
  0xb5   :  { %1070 = vrot.lane.b32.xlu1 %v1063_v12, %s4066_s17  ;;  %1289 = vrot.lane.b32.xlu0 %v1282_v13, %s4060_s26 }
  0xb9   :  { %1685 = vrot.lane.b32.xlu1 %v1681_v15, %s4070_s30  ;;  %1687 = vrot.lane.b32.xlu0 %v1674_v14, %s4070_s30 }
  0xbd   :  { %1683 = vrot.lane.b32.xlu1 %v1673_v11, %s4070_s30  ;;  %1689 = vrot.lane.b32.xlu0 %v1682_v44, %s4070_s30  ;;  %v3920_v11 = vld [vmem:[%s4868_s2 + $0x18] sm:$0xf]  ;;  %v3927_v44 = vld [vmem:[%s4868_s2 + $0x1c] sm:$0xf] }
  0xc1   :  { %1691 = vrot.lane.b32.xlu1 %v1675_v17, %s4070_s30  ;;  %1858 = vperm.xlu0 %4025, %v1855_v43  }
  0xf7   :  { %v672_v23 = vpop.permute.xlu0 %671  ;;  %v453_v25 = vpop.permute.xlu1 %452 }
  0xfb   :  { %v4379_v26 = vpop.permute.xlu0 %1072 }
  0xff   :  { %v4381_v27 = vpop.permute.xlu1 %1291  ;;  %v664_v28 = vpop.permute.xlu0 %663 }
 0x103   :  { %v445_v29 = vpop.permute.xlu1 %444  ;;  %v1065_v30 = vpop.permute.xlu0 %1064 }
 0x107   :  { %v4383_v31 = vpop.permute.xlu1 %1283  ;;  %v449_v32 = vpop.permute.xlu0 %448 }
 0x10b   :  { %v668_v33 = vpop.permute.xlu1 %667  ;;  %v4385_v34 = vpop.permute.xlu0 %1287 }
 0x10f   :  { %v4387_v35 = vpop.permute.xlu1 %1068  ;;  %v666_v36 = vpop.permute.xlu0 %665 }
 0x110   :  { %v675_v46 = vsel %vm673_vm8, %v666_v36, %v668_v33  ;;  %v674_v47 = vsel %vm673_vm8, %v664_v28, %v666_v36 }
 0x113   :  { %v447_v37 = vpop.permute.xlu1 %446  ;;  %v1067_v38 = vpop.permute.xlu0 %1066 }
 0x114   :  { %v455_v39 = vsel %vm454_vm7, %v445_v29, %v447_v37  ;;  %v456_v40 = vsel %vm454_vm7, %v447_v37, %v449_v32  ;;  %v1076_v57 = vsel %vm1074_vm10, %v1067_v38, %v4387_v35  ;;  %v1075_v59 = vsel %vm1074_vm10, %v1065_v30, %v1067_v38 }
 0x115   :  { %3890 = vmatprep.subr.msk.mxu0 %vm90_vm2, %v456_v40 }
 0x116   :  { %3891 = vmatpush1.msk.msra.mxu0 %vm90_vm2, %v455_v39 }
 0x117   :  { %v1286_v48 = vpop.permute.xlu1 %1285  ;;  %v451_v50 = vpop.permute.xlu0 %450  ;;  %3892 = vmatmul.mubr.msk.f32.vlgmr.msra.gmra.mxu0 %vm86_vm1, %v3889_v45  ;;  %3898 = vmatprep.subr.msk.mxu0 %vm90_vm2, %v675_v46 }
 0x118   :  { %v457_v51 = vsel %vm454_vm7, %v449_v32, %v451_v50  ;;  %v458_v49 = vsel %vm454_vm7, %v451_v50, %v453_v25  ;;  %3899 = vmatpush1.msk.msra.mxu0 %vm90_vm2, %v674_v47  ;;  %753 = vmatprep.mubr.f32.mxu0 %v4067_v24  ;;  %v1294_v62 = vsel %vm1266_vm5, %v1286_v48, %v4385_v34 }
 0x119   :  { %3893 = vmatprep.subr.msk.mxu1 %vm90_vm2, %v458_v49  ;;  %3905 = vmatprep.subr.msk.mxu0 %vm90_vm2, %v857_v52  ;;  %v1293_v42 = vsel %vm1266_vm5, %v4383_v31, %v1286_v48 }
 0x11a   :  { %3894 = vmatpush1.msk.msra.mxu1 %vm90_vm2, %v457_v51 }
 0x11b   :  { %v4413_v55 = vpop.permute.xlu1 %1468  ;;  %3895 = vmatmul.mubr.msk.f32.vlgmr.msra.gmra.mxu1 %vm86_vm1, %v3889_v45  ;;  %v1467_v56 = vpop.permute.xlu0 %1466  ;;  %3900 = vmatmul.mubr.msk.f32.vlgmr.msra.gmra.mxu0 %vm86_vm1, %v3897_v53 }
 0x11c   :  { %3906 = vmatpush1.msk.msra.mxu0 %vm90_vm2, %v856_v54  ;;  %935 = vmatprep.mubr.f32.mxu0 %v4067_v24  ;;  %v1476_v10 = vsel %vm4878_vm11, %v1467_v56, %v4413_v55 }
 0x11d   :  { %3913 = vmatprep.subr.msk.mxu0 %vm90_vm2, %v1076_v57  ;;  %824 = vmatprep.mubr.f32.mxu1 %v4067_v24 }
 0x11f   :  { %v670_v60 = vpop.permute.xlu1 %669  ;;  %v1465_v61 = vpop.permute.xlu0 %1464  ;;  %3907 = vmatmul.mubr.msk.f32.vlgmr.msra.gmra.mxu0 %vm86_vm1, %v3904_v58 }
 0x120   :  { %v676_v63 = vsel %vm673_vm8, %v668_v33, %v670_v60  ;;  %v677_v0 = vsel %vm673_vm8, %v670_v60, %v672_v23  ;;  %3914 = vmatpush1.msk.msra.mxu0 %vm90_vm2, %v1075_v59  ;;  %1154 = vmatprep.mubr.f32.mxu0 %v4067_v24  ;;  %v1475_v14 = vsel %vm4878_vm11, %v1465_v61, %v1467_v56  ;;  %v3935_v23 = vld [vmem:[%s4868_s2 + $0x20] sm:$0xf] }
 0x121   :  { %3921 = vmatprep.subr.msk.mxu0 %vm90_vm2, %v1294_v62  ;;  %3901 = vmatprep.subr.msk.mxu1 %vm90_vm2, %v677_v0 }
 0x122   :  { %3902 = vmatpush1.msk.msra.mxu1 %vm90_vm2, %v676_v63 }
 0x123   :  { %v1471_v8 = vpop.permute.xlu1 %1470  ;;  %3903 = vmatmul.mubr.msk.f32.vlgmr.msra.gmra.mxu1 %vm86_vm1, %v3897_v53  ;;  %3908 = vmatprep.subr.msk.mxu1 %vm90_vm2, %v859_v2  ;;  %v1473_v9 = vpop.permute.xlu0 %1472 }
 0x124   :  { %3915 = vmatmul.mubr.msk.f32.vlgmr.msra.gmra.mxu0 %vm86_vm1, %v3912_v1  ;;  %3909 = vmatpush1.msk.msra.mxu1 %vm90_vm2, %v858_v3  ;;  %v1478_v20 = vsel %vm4878_vm11, %v1471_v8, %v1473_v9  ;;  %v1477_v21 = vsel %vm4878_vm11, %v4413_v55, %v1471_v8  ;;  %vm1948_vm11 = vmor %vm1947_vm14, %vm1946_vm15 }
 0x125   :  { %3922 = vmatpush1.msk.msra.mxu0 %vm90_vm2, %v1293_v42  ;;  %1006 = vmatprep.mubr.f32.mxu1 %v4067_v24 }
 0x126   :  { %3928 = vmatprep.subr.msk.mxu0 %vm90_vm2, %v1476_v10  ;;  %1372 = vmatprep.mubr.f32.mxu0 %v4067_v24 }
 0x127   :  { %v1071_v12 = vpop.permute.xlu1 %1070  ;;  %3910 = vmatmul.mubr.msk.f32.vlgmr.msra.gmra.mxu1 %vm86_vm1, %v3904_v58  ;;  %v1290_v13 = vpop.permute.xlu0 %1289 }
 0x128   :  { %v1077_v15 = vsel %vm1074_vm10, %v4387_v35, %v1071_v12  ;;  %v1078_v16 = vsel %vm1074_vm10, %v1071_v12, %v4379_v26  ;;  %3923 = vmatmul.mubr.msk.f32.vlgmr.msra.gmra.mxu0 %vm86_vm1, %v3920_v11  ;;  %1225 = vmatprep.mubr.f32.mxu1 %v4067_v24  ;;  %v1296_v41 = vsel %vm1266_vm5, %v1290_v13, %v4381_v27 }
 0x129   :  { %3929 = vmatpush1.msk.msra.mxu0 %vm90_vm2, %v1475_v14  ;;  %3916 = vmatprep.subr.msk.mxu1 %vm90_vm2, %v1078_v16  ;;  %v1295_v18 = vsel %vm1266_vm5, %v4385_v34, %v1290_v13 }
 0x12a   :  { %3917 = vmatpush1.msk.msra.mxu1 %vm90_vm2, %v1077_v15  ;;  %1554 = vmatprep.mubr.f32.mxu0 %v4067_v24 }
 0x12b   :  { %v1686_v43 = vpop.permute.xlu1 %1685  ;;  %3918 = vmatmul.mubr.msk.f32.vlgmr.msra.gmra.mxu1 %vm86_vm1, %v3912_v1  ;;  %v1688_v17 = vpop.permute.xlu0 %1687  ;;  %3924 = vmatprep.subr.msk.mxu1 %vm90_vm2, %v1296_v41 }
 0x12c   :  { %v1695_v19 = vsel %vm4877_vm12, %v1686_v43, %v1688_v17  ;;  %3930 = vmatmul.mubr.msk.f32.vlgmr.msra.gmra.mxu0 %vm86_vm1, %v3927_v44  ;;  %3925 = vmatpush1.msk.msra.mxu1 %vm90_vm2, %v1295_v18 }
 0x12d   :  { %3936 = vmatprep.subr.msk.mxu0 %vm90_vm2, %v1695_v19  ;;  %3931 = vmatprep.subr.msk.mxu1 %vm90_vm2, %v1478_v20 }
 0x12e   :  { %1443 = vmatprep.mubr.f32.mxu1 %v4067_v24  ;;  %1773 = vmatprep.mubr.f32.mxu0 %v4067_v24 }
 0x12f   :  { %v1684_v22 = vpop.permute.xlu1 %1683  ;;  %3926 = vmatmul.mubr.msk.f32.vlgmr.msra.gmra.mxu1 %vm86_vm1, %v3920_v11  ;;  %v1690_v26 = vpop.permute.xlu0 %1689 }
 0x130   :  { %v1694_v25 = vsel %vm4877_vm12, %v1684_v22, %v1686_v43  ;;  %3932 = vmatpush1.msk.msra.mxu1 %vm90_vm2, %v1477_v21  ;;  %1625 = vmatprep.mubr.f32.mxu1 %v4067_v24  ;;  %v1696_v29 = vsel %vm4877_vm12, %v1688_v17, %v1690_v26 }
 0x131   :  { %3937 = vmatpush1.msk.msra.mxu0 %vm90_vm2, %v1694_v25 }
 0x132   :  { %3938 = vmatmul.mubr.msk.f32.vlgmr.msra.gmra.mxu0 %vm86_vm1, %v3935_v23 }
 0x133   :  { %v1692_v27 = vpop.permute.xlu1 %1691  ;;  %3933 = vmatmul.mubr.msk.f32.vlgmr.msra.gmra.mxu1 %vm86_vm1, %v3927_v44  ;;  %2076 = vmatprep.mubr.f32.mxu0 %v4067_v24 }
 0x134   :  { %v1697_v28 = vsel %vm4877_vm12, %v1690_v26, %v1692_v27  ;;  %1844 = vmatprep.mubr.f32.mxu1 %v4067_v24  ;;  %vm1939_vm12 = vcmask 277504  }
 0x135   :  { %3939 = vmatprep.subr.msk.mxu1 %vm90_vm2, %v1697_v28 }
 0x136   :  { %3940 = vmatpush1.msk.msra.mxu1 %vm90_vm2, %v1696_v29 }
 0x137   :  { %3941 = vmatmul.mubr.msk.f32.vlgmr.msra.gmra.mxu1 %vm86_vm1, %v3935_v23 }
 0x138   :  { %2147 = vmatprep.mubr.f32.mxu1 %v4067_v24 }
 0x13c   :  { %v1859_v23 = vpop.permute.xlu0 %1858 }
 0x157   :  { %v165_v30 = vpop.f32.mrf.mxu0 }
 0x159   :  { %v167_v31 = vpop.f32.mrf.mxu0 }
 0x15b   :  { %v322_v33 = vpop.f32.mrf.mxu0 }
 0x15c   :  { %v236_v32 = vpop.f32.mrf.mxu1  ;;  %v323_v52 = vadd.f32 %v322_v33, %v165_v30 }
 0x15d   :  { %v324_v35 = vpop.f32.mrf.mxu0 }
 0x15e   :  { %v238_v34 = vpop.f32.mrf.mxu1  ;;  %v325_v55 = vadd.f32 %v324_v35, %v167_v31 }
 0x160   :  { %v393_v36 = vpop.f32.mrf.mxu1 }
 0x161   :  { %v394_v62 = vadd.f32 %v393_v36, %v236_v32 }
 0x162   :  { %v395_v39 = vpop.f32.mrf.mxu1 }
 0x163   :  { %v396_v3 = vadd.f32 %v395_v39, %v238_v34 }
 0x1d7   :  { %v536_v37 = vpop.f32.mrf.mxu0 }
 0x1d8   :  { %v612_v56 = vadd.f32 %v536_v37, %v323_v52 }
 0x1d9   :  { %v538_v38 = vpop.f32.mrf.mxu0 }
 0x1da   :  { %v613_v59 = vadd.f32 %v538_v38, %v325_v55  ;;  %v1893_v55 = vld [vmem:[%s4870_s4] sm:$0xf]  ;;  %s4071_s4 = smov 34  }
 0x1db   :  { %v755_v40 = vpop.f32.mrf.mxu0  ;;  %v607_v45 = vpop.f32.mrf.mxu1 }
 0x1dc   :  { %v831_v60 = vadd.f32 %v755_v40, %v612_v56  ;;  %v614_v8 = vadd.f32 %v607_v45, %v394_v62 }
 0x1dd   :  { %v757_v46 = vpop.f32.mrf.mxu0  ;;  %v609_v48 = vpop.f32.mrf.mxu1 }
 0x1de   :  { %v832_v0 = vadd.f32 %v757_v46, %v613_v59  ;;  %v615_v12 = vadd.f32 %v609_v48, %v396_v3 }
 0x1df   :  { %v937_v47 = vpop.f32.mrf.mxu0 }
 0x1e0   :  { %v1013_v1 = vadd.f32 %v937_v47, %v831_v60 }
 0x1e1   :  { %v939_v50 = vpop.f32.mrf.mxu0 }
 0x1e2   :  { %v1014_v42 = vadd.f32 %v939_v50, %v832_v0 }
 0x1e3   :  { %v826_v51 = vpop.f32.mrf.mxu1 }
 0x1e4   :  { %v1156_v49 = vpop.f32.mrf.mxu0  ;;  %v833_v13 = vadd.f32 %v826_v51, %v614_v8 }
 0x1e5   :  { %v828_v53 = vpop.f32.mrf.mxu1  ;;  %v1232_v10 = vadd.f32 %v1156_v49, %v1013_v1 }
 0x1e6   :  { %v1158_v54 = vpop.f32.mrf.mxu0  ;;  %v834_v44 = vadd.f32 %v828_v53, %v615_v12  ;;  %v1909_v12 = vld [vmem:[%s4871_s5] sm:$0xf] }
 0x1e7   :  { %v1008_v57 = vpop.f32.mrf.mxu1  ;;  %v1233_v14 = vadd.f32 %v1158_v54, %v1014_v42 }
 0x1e8   :  { %v1374_v58 = vpop.f32.mrf.mxu0  ;;  %v1015_v41 = vadd.f32 %v1008_v57, %v833_v13  ;;  %v3955_v13 = vld [vmem:[%s4867_s1 + $0x8] sm:$0xf] }
 0x1e9   :  { %v1010_v61 = vpop.f32.mrf.mxu1  ;;  %v1450_v15 = vadd.f32 %v1374_v58, %v1232_v10 }
 0x1ea   :  { %v1376_v63 = vpop.f32.mrf.mxu0  ;;  %v1016_v20 = vadd.f32 %v1010_v61, %v834_v44  ;;  %v3963_v44 = vld [vmem:[%s4867_s1 + $0xc] sm:$0xf] }
 0x1eb   :  { %v1227_v2 = vpop.f32.mrf.mxu1  ;;  %v1451_v17 = vadd.f32 %v1376_v63, %v1233_v14  ;;  %v2319_v14 = vrot.slane %v3955_v13, %v4134_v4 }
 0x1ec   :  { %v1556_v9 = vpop.f32.mrf.mxu0  ;;  %v1234_v21 = vadd.f32 %v1227_v2, %v1015_v41  ;;  %v2535_v41 = vrot.slane %v3963_v44, %v4134_v4 }
 0x1ed   :  { %v1229_v11 = vpop.f32.mrf.mxu1  ;;  %v1632_v18 = vadd.f32 %v1556_v9, %v1450_v15  ;;  %v2323_v15 = vrot.slane %v3955_v13, %v4136_v5 }
 0x1ee   :  { %v1558_v43 = vpop.f32.mrf.mxu0  ;;  %v1235_v28 = vadd.f32 %v1229_v11, %v1016_v20 }
 0x1ef   :  { %v1445_v16 = vpop.f32.mrf.mxu1  ;;  %v1633_v25 = vadd.f32 %v1558_v43, %v1451_v17  ;;  %v2539_v43 = vrot.slane %v3963_v44, %v4136_v5  ;;  %v3978_v17 = vld [vmem:[%s4867_s1 + $0x14] sm:$0xf] }
 0x1f0   :  { %v1452_v29 = vadd.f32 %v1445_v16, %v1234_v21  ;;  %v2332_v16 = vcombine.low %v2319_v14, %v2323_v15  ;;  %v2936_v20 = vrot.slane %v3978_v17, %v4136_v5 }
 0x1f1   :  { %v1447_v19 = vpop.f32.mrf.mxu1 }
 0x1f2   :  { %v1775_v22 = vpop.f32.mrf.mxu0  ;;  %v1453_v34 = vadd.f32 %v1447_v19, %v1235_v28  ;;  %v2932_v19 = vrot.slane %v3978_v17, %v4134_v4 }
 0x1f3   :  { %v1851_v26 = vadd.f32 %v1775_v22, %v1632_v18  ;;  %v1627_v27 = vpop.f32.mrf.mxu1  ;;  %v2548_v18 = vcombine.low %v2535_v41, %v2539_v43  ;;  %v3986_v22 = vld [vmem:[%s4867_s1 + $0x18] sm:$0xf] }
 0x1f4   :  { %v1777_v30 = vpop.f32.mrf.mxu0  ;;  %v1634_v35 = vadd.f32 %v1627_v27, %v1452_v29  ;;  %v2945_v21 = vcombine.low %v2932_v19, %v2936_v20  ;;  %v4001_v27 = vld [vmem:[%s4867_s1 + $0x20] sm:$0xf] }
 0x1f5   :  { %v1861_v31 = vadd.f32 %v1859_v23, %v1851_v26  ;;  %v1852_v32 = vadd.f32 %v1777_v30, %v1633_v25  ;;  %v1629_v33 = vpop.f32.mrf.mxu1  ;;  %v3152_v25 = vrot.slane %v3986_v22, %v4136_v5  ;;  %v3545_v28 = vrot.slane %v4001_v27, %v4134_v4 }
 0x1f6   :  { %v1635_v38 = vadd.f32 %v1629_v33, %v1453_v34  ;;  %v3549_v29 = vrot.slane %v4001_v27, %v4136_v5 }
 0x1f7   :  { %v1862_v36 = vadd.f32 %v1859_v23, %v1852_v32  ;;  %v1846_v37 = vpop.f32.mrf.mxu1  ;;  %v1865_v46 = vsel %vm90_vm2, %v1861_v31, 0.0 }
 0x1f8   :  { %v1853_v39 = vadd.f32 %v1846_v37, %v1634_v35  ;;  %v3558_v30 = vcombine.low %v3545_v28, %v3549_v29 }
 0x1f9   :  { %v1866_v40 = vsel %vm90_vm2, %v1862_v36, 0.0  ;;  %v1848_v45 = vpop.f32.mrf.mxu1 }
 0x1fa   :  { %v1863_v47 = vadd.f32 %v1859_v23, %v1853_v39  ;;  %v1854_v48 = vadd.f32 %v1848_v45, %v1635_v38  ;;  %v1867_v50 = vadd.f32 %v1866_v40, %v1865_v46 }
 0x1fc   :  { %v1864_v51 = vadd.f32 %v1859_v23, %v1854_v48  ;;  %v1868_v49 = vsel %vm90_vm2, %v1863_v47, 0.0  ;;  %v3148_v23 = vrot.slane %v3986_v22, %v4134_v4 }
 0x1fd   :  { %v1869_v52 = vadd.f32 %v1868_v49, %v1867_v50 }
 0x1fe   :  { %v1870_v53 = vsel %vm90_vm2, %v1864_v51, 0.0  ;;  %v3161_v26 = vcombine.low %v3148_v23, %v3152_v25 }
 0x1ff   :  { %v1871_v54 = vadd.f32 %v1870_v53, %v1869_v52 }
 0x201   :  { %1872 = vadd.xlane.f32.xlu1 %v1871_v54 }
 0x212   :  { %1896 = vperm.xlu1 %4026, %v1893_v55  }
 0x28a   :  { %v1873_v56 = vpop.xlane.xlu1 %1872 }
 0x28b   :  { %v1874_v57 = vmul.f32 0.001953125, %v1873_v56 }
 0x28d   :  { %v1875_v58 = vsub.f32 %v1861_v31, %v1874_v57  ;;  %v1876_v59 = vsub.f32 %v1862_v36, %v1874_v57  ;;  %v1877_v60 = vsub.f32 %v1863_v47, %v1874_v57  ;;  %v1878_v61 = vsub.f32 %v1864_v51, %v1874_v57 }
 0x28e   :  { %v1897_v34 = vpop.permute.xlu1 %1896 }
 0x28f   :  { %v1879_v62 = vmul.f32 %v1875_v58, %v1875_v58  ;;  %v1880_v63 = vmul.f32 %v1876_v59, %v1876_v59  ;;  %v1881_v0 = vmul.f32 %v1877_v60, %v1877_v60  ;;  %v1882_v1 = vmul.f32 %v1878_v61, %v1878_v61 }
 0x290   :  { %v1899_v35 = vmul.f32 %v1897_v34, %v1875_v58  ;;  %v1900_v36 = vmul.f32 %v1897_v34, %v1876_v59  ;;  %v1901_v37 = vmul.f32 %v1897_v34, %v1877_v60  ;;  %v1902_v38 = vmul.f32 %v1897_v34, %v1878_v61 }
 0x291   :  { %v1883_v2 = vsel %vm90_vm2, %v1879_v62, 0.0  ;;  %v1884_v3 = vsel %vm90_vm2, %v1880_v63, 0.0  ;;  %v1886_v9 = vsel %vm90_vm2, %v1881_v0, 0.0  ;;  %v1888_v10 = vsel %vm90_vm2, %v1882_v1, 0.0 }
 0x292   :  { %v1885_v8 = vadd.f32 %v1884_v3, %v1883_v2  ;;  %v2327_v59 = vrot.slane %v3955_v13, %v4138_v6  ;;  %v2331_v60 = vrot.slane %v3955_v13, %v4140_v7  ;;  %v2543_v62 = vrot.slane %v3963_v44, %v4138_v6 }
 0x293   :  { %v2547_v63 = vrot.slane %v3963_v44, %v4140_v7  ;;  %v2940_v1 = vrot.slane %v3978_v17, %v4138_v6  ;;  %v2944_v2 = vrot.slane %v3978_v17, %v4140_v7 }
 0x294   :  { %v1887_v42 = vadd.f32 %v1886_v9, %v1885_v8  ;;  %v2333_v61 = vcombine.low %v2327_v59, %v2331_v60  ;;  %v3156_v8 = vrot.slane %v3986_v22, %v4138_v6  ;;  %v3160_v9 = vrot.slane %v3986_v22, %v4140_v7 }
 0x295   :  { %v2549_v0 = vcombine.low %v2543_v62, %v2547_v63  ;;  %v2946_v3 = vcombine.low %v2940_v1, %v2944_v2 }
 0x296   :  { %v1889_v11 = vadd.f32 %v1888_v10, %v1887_v42  ;;  %v3162_v42 = vcombine.low %v3156_v8, %v3160_v9  ;;  %v3553_v10 = vrot.slane %v4001_v27, %v4138_v6 }
 0x298   :  { %1890 = vadd.xlane.f32.xlu0 %v1889_v11  ;;  %v3557_v11 = vrot.slane %v4001_v27, %v4140_v7 }
 0x2ae   :  { %1912 = vperm.xlu0 %4025, %v1909_v12   ;;  %v3559_v12 = vcombine.low %v3553_v10, %v3557_v11 }
 0x2b2   :  { %2334 = vrot.lane.b32.xlu0 %v2332_v16, %s4058_s20 }
 0x2b6   :  { %2550 = vrot.lane.b32.xlu0 %v2548_v18, %s4057_s19 }
 0x2ba   :  { %2947 = vrot.lane.b32.xlu0 %v2945_v21, %s4059_s25 }
 0x2be   :  { %3163 = vrot.lane.b32.xlu0 %v3161_v26, %s4060_s26 }
 0x2c2   :  { %3560 = vrot.lane.b32.xlu0 %v3558_v30, %s4061_s29 }
 0x321   :  { %v1891_v31 = vpop.xlane.xlu0 %1890 }
 0x322   :  { %v1892_v32 = vmul.f32 0.001953125, %v1891_v31 }
 0x324   :  { %v1903_v33 = vadd.f32 1e-05, %v1892_v32 }
 0x326   :  { %4031 = vrsqrt.f32 %v1903_v33 }
 0x329   :  { %v1913_v48 = vpop.permute.xlu0 %1912 }
 0x32d   :  { %v2335_v20 = vpop.permute.xlu0 %2334 }
 0x32e   :  { %v2338_v34 = vrot.slane %v2335_v20, 4 }
 0x331   :  { %v2551_v27 = vpop.permute.xlu0 %2550 }
 0x333   :  { %v4032_v39 = vpop.eup %4031 }
 0x334   :  { %v1905_v40 = vmul.f32 %v4032_v39, %v1899_v35  ;;  %v1906_v45 = vmul.f32 %v4032_v39, %v1900_v36  ;;  %v1907_v46 = vmul.f32 %v4032_v39, %v1901_v37  ;;  %v1908_v47 = vmul.f32 %v4032_v39, %v1902_v38 }
 0x335   :  { %v2948_v36 = vpop.permute.xlu0 %2947 }
 0x336   :  { %v1915_v50 = vadd.f32 %v1913_v48, %v1905_v40  ;;  %v1916_v51 = vadd.f32 %v1913_v48, %v1906_v45  ;;  %v1917_v49 = vadd.f32 %v1913_v48, %v1907_v46  ;;  %v1918_v52 = vadd.f32 %v1913_v48, %v1908_v47 }
 0x337   :  { %v2340_v40 = vsel %vm86_vm1, %v2338_v34, %v2335_v20  ;;  %v2554_v46 = vrot.slane %v2551_v27, 4 }
 0x338   :  { %v1919_v53 = vmax.f32 %v1915_v50, 0.0  ;;  %v1920_v54 = vmax.f32 %v1916_v51, 0.0  ;;  %v1921_v55 = vmax.f32 %v1917_v49, 0.0  ;;  %v1922_v56 = vmax.f32 %v1918_v52, 0.0 }
 0x339   :  { %v3164_v47 = vpop.permute.xlu0 %3163  ;;  %v2556_v49 = vsel %vm646_vm0, %v2554_v46, %v2551_v27  ;;  %v2951_v52 = vrot.slane %v2948_v36, 4 }
 0x33a   :  { %v1931_v57 = vcombine.low %v1919_v53, %v1920_v54  ;;  %v1932_v58 = vcombine.low %v1921_v55, %v1922_v56  ;;  %v3167_v50 = vrot.slane %v3164_v47, 4 }
 0x33b   :  { %v2953_v55 = vsel %vm1047_vm3, %v2951_v52, %v2948_v36 }
 0x33c   :  { %1933 = vrot.lane.b32.xlu1 %v1931_v57, %s4071_s4  ;;  %v3169_v53 = vsel %vm1266_vm5, %v3167_v50, %v3164_v47 }
 0x340   :  { %1935 = vrot.lane.b32.xlu1 %v1932_v58, %s4071_s4 }
 0x344   :  { %2336 = vrot.lane.b32.xlu1 %v2333_v61, %s4058_s20 }
 0x348   :  { %2552 = vrot.lane.b32.xlu1 %v2549_v0, %s4057_s19 }
 0x34c   :  { %2949 = vrot.lane.b32.xlu1 %v2946_v3, %s4059_s25 }
 0x350   :  { %3165 = vrot.lane.b32.xlu1 %v3162_v42, %s4060_s26 }
 0x354   :  { %3562 = vrot.lane.b32.xlu1 %v3559_v12, %s4061_s29 }
 0x3ae   :  { %v1934_v13 = vpop.permute.xlu1 %1933 }
 0x3af   :  { %v1937_v14 = vrot.slane %v1934_v13, 4 }
 0x3b1   :  { %v1940_v15 = vsel %vm1939_vm12, %v1937_v14, %v1934_v13 }
 0x3b2   :  { %1949 = vst.msk [vmem:[#allocation2] sm:$0xff] %vm1948_vm11, %v1940_v15  ;;  %v1936_v16 = vpop.permute.xlu1 %1935  ;;  %v3561_v15 = vpop.permute.xlu0 %3560 }
 0x3b3   :  { %v1938_v44 = vrot.slane %v1936_v16, 4 }
 0x3b5   :  { %v1941_v41 = vsel %vm90_vm2, %v1937_v14, %v1938_v44  ;;  %1951 = vst.msk [vmem:[#allocation2 + $0x10] sm:$0xf] %vm1923_vm13, %v1938_v44  ;;  %v3564_v44 = vrot.slane %v3561_v15, 4 }
 0x3b6   :  { %v4574_v43 = vsel %vm1939_vm12, %v1941_v41, %v1936_v16  ;;  %v2337_v17 = vpop.permute.xlu1 %2336 }
 0x3b7   :  { %v2339_v31 = vrot.slane %v2337_v17, 4  ;;  %v2752_v61 = vcombine.high %v4574_v43, %v4574_v43 }
 0x3b9   :  { %v4578_v23 = vld [vmem:[#allocation2] sm:$0xff]  ;;  %v2341_v56 = vsel %vm90_vm2, %v2338_v34, %v2339_v31 }
 0x3ba   :  { %v2553_v18 = vpop.permute.xlu1 %2552  ;;  %v2346_v48 = vmul.f32 %v4578_v23, %v2340_v40  ;;  %v2751_v51 = vcombine.high %v4578_v23, %v4578_v23  ;;  %v2562_v54 = vmul.f32 %v4578_v23, %v2556_v49  ;;  %v3175_v57 = vmul.f32 %v3169_v53, %v4578_v23  ;;  %v1954_v40 = vld [vmem:[%s4867_s1] sm:$0xf] }
 0x3bb   :  { %v2555_v25 = vrot.slane %v2553_v18, 4  ;;  %v2959_v58 = vmul.f32 %v4578_v23, %v2953_v55  ;;  %v2342_v59 = vsel %vm86_vm1, %v2341_v56, %v2337_v17  ;;  %v3566_v17 = vsel %vm1666_vm6, %v3564_v44, %v3561_v15 }
 0x3bc   :  { %v2745_v19 = vld [vmem:[#allocation2 + $0x10] sm:$0xf]  ;;  %v2347_v62 = vmul.f32 %v2342_v59, %v4574_v43  ;;  %v2354_v10 = vcombine.high %v2346_v48, %v2346_v48  ;;  %v2570_v11 = vcombine.high %v2562_v54, %v2562_v54  ;;  %v3183_v12 = vcombine.high %v3175_v57, %v3175_v57 }
 0x3bd   :  { %2761 = vrot.lane.b32.xlu1 %v2745_v19, %s4063_s15  ;;  %v1979_v21 = vld [vmem:[#allocation2 + $0x10] sm:$0xf]  ;;  %v2557_v60 = vsel %vm90_vm2, %v2554_v46, %v2555_v25  ;;  %v2967_v13 = vcombine.high %v2959_v58, %v2959_v58  ;;  %v3572_v19 = vmul.f32 %v3566_v17, %v4578_v23  ;;  %v1963_v46 = vrot.slane %v1954_v40, %v4136_v5 }
 0x3be   :  { %1995 = vrot.lane.b32.xlu0 %v1979_v21, %s4062_s12  ;;  %v2950_v22 = vpop.permute.xlu1 %2949  ;;  %v2529_v26 = vld [vmem:[#allocation2 + $0x10] sm:$0xf]  ;;  %v2558_v63 = vsel %vm646_vm0, %v2557_v60, %v2553_v18  ;;  %v2355_v14 = vcombine.high %v2347_v62, %v2347_v62  ;;  %v1967_v55 = vrot.slane %v1954_v40, %v4138_v6  ;;  %v1971_v56 = vrot.slane %v1954_v40, %v4140_v7  ;;  %v1978_v7 = vld [vmem:[%s4872_s6] sm:$0xf] }
 0x3bf   :  { %v2313_v28 = vld [vmem:[#allocation2 + $0x10] sm:$0xf]  ;;  %v2564_v29 = vmul.f32 %v2555_v25, %v2529_v26  ;;  %v2952_v35 = vrot.slane %v2950_v22, 4  ;;  %v2563_v2 = vmul.f32 %v2558_v63, %v4574_v43  ;;  %v3580_v25 = vcombine.high %v3572_v19, %v3572_v19 }
 0x3c0   :  { %v2348_v32 = vmul.f32 %v2339_v31, %v2313_v28  ;;  %v3142_v37 = vld [vmem:[#allocation2 + $0x10] sm:$0xf]  ;;  %v1973_v6 = vcombine.low %v1967_v55, %v1971_v56  ;;  %vm4879_vm0 = vcmask 506880  }
 0x3c1   :  { %2753 = vrot.lane.b32.xlu1 %v4578_v23, %s4063_s15  ;;  %v2926_v38 = vld [vmem:[#allocation2 + $0x10] sm:$0xf]  ;;  %v2954_v0 = vsel %vm90_vm2, %v2951_v52, %v2952_v35  ;;  %v2571_v16 = vcombine.high %v2563_v2, %v2563_v2 }
 0x3c2   :  { %1987 = vrot.lane.b32.xlu0 %v4578_v23, %s4062_s12  ;;  %v3166_v30 = vpop.permute.xlu1 %3165  ;;  %v2961_v45 = vmul.f32 %v2952_v35, %v2926_v38  ;;  %v2955_v3 = vsel %vm1047_vm3, %v2954_v0, %v2950_v22  ;;  %v3358_v21 = vld [vmem:[#allocation2 + $0x10] sm:$0xf]  ;;  %vm4880_vm3 = vmmov %vm4879_vm0 }
 0x3c3   :  { %v3168_v33 = vrot.slane %v3166_v30, 4  ;;  %v2960_v9 = vmul.f32 %v2955_v3, %v4574_v43 }
 0x3c5   :  { %1991 = vrot.lane.b32.xlu1 %v4574_v43, %s4062_s12  ;;  %v3177_v39 = vmul.f32 %v3168_v33, %v3142_v37  ;;  %v3170_v1 = vsel %vm90_vm2, %v3167_v50, %v3168_v33  ;;  %v2968_v20 = vcombine.high %v2960_v9, %v2960_v9  ;;  %v3794_v33 = vld [vmem:[%s4874_s8] sm:$0xf] }
 0x3c6   :  { %2580 = vrot.lane.b32.xlu0 %v2564_v29, %s4064_s11  ;;  %v3171_v8 = vsel %vm1266_vm5, %v3170_v1, %v3166_v30  ;;  %v3563_v41 = vpop.permute.xlu1 %3562  ;;  %v3539_v29 = vld [vmem:[#allocation2 + $0x10] sm:$0xf] }
 0x3c7   :  { %v3176_v42 = vmul.f32 %v3171_v8, %v4574_v43  ;;  %v3565_v18 = vrot.slane %v3563_v41, 4 }
 0x3c9   :  { %2364 = vrot.lane.b32.xlu1 %v2348_v32, %s4065_s13  ;;  %v3567_v22 = vsel %vm90_vm2, %v3564_v44, %v3565_v18  ;;  %v3184_v26 = vcombine.high %v3176_v42, %v3176_v42  ;;  %v3574_v30 = vmul.f32 %v3565_v18, %v3539_v29  ;;  %v3753_v32 = vld [vmem:[%s4873_s7] sm:$0xf]  ;;  %v3964_v18 = vld [vmem:[%s4872_s6 + $0xc] sm:$0xf] }
 0x3ca   :  { %2757 = vrot.lane.b32.xlu0 %v4574_v43, %s4063_s15  ;;  %v3568_v27 = vsel %vm1666_vm6, %v3567_v22, %v3563_v41  ;;  %vm4882_vm6 = vmmov %vm4879_vm0 }
 0x3cb   :  { %v3573_v28 = vmul.f32 %v3568_v27, %v4574_v43 }
 0x3cd   :  { %3193 = vrot.lane.b32.xlu1 %v3177_v39, %s4060_s26  ;;  %v3581_v31 = vcombine.high %v3573_v28, %v3573_v28 }
 0x3ce   :  { %2977 = vrot.lane.b32.xlu0 %v2961_v45, %s4066_s17  ;;  %v1959_v45 = vrot.slane %v1954_v40, %v4134_v4 }
 0x3d0   :  { %v1972_v50 = vcombine.low %v1959_v45, %v1963_v46  ;;  %v3987_v45 = vld [vmem:[%s4872_s6 + $0x18] sm:$0xf] }
 0x3d1   :  { %2356 = vrot.lane.b32.xlu1 %v2346_v48, %s4065_s13 }
 0x3d2   :  { %1989 = vrot.lane.b32.xlu0 %v2751_v51, %s4062_s12  ;;  %v1976_v52 = vmul.f32 %v4578_v23, %v1972_v50 }
 0x3d5   :  { %2755 = vrot.lane.b32.xlu1 %v2751_v51, %s4063_s15 }
 0x3d6   :  { %2572 = vrot.lane.b32.xlu0 %v2562_v54, %s4064_s11 }
 0x3d9   :  { %3185 = vrot.lane.b32.xlu1 %v3175_v57, %s4060_s26  ;;  %v3942_v57 = vld [vmem:[%s4872_s6 + $0x4] sm:$0xf] }
 0x3da   :  { %2969 = vrot.lane.b32.xlu0 %v2959_v58, %s4066_s17  ;;  %v2156_v58 = vcombine.high %v1976_v52, %v1976_v52 }
 0x3dd   :  { %1993 = vrot.lane.b32.xlu1 %v2752_v61, %s4062_s12 }
 0x3de   :  { %2360 = vrot.lane.b32.xlu0 %v2347_v62, %s4065_s13  ;;  %v1977_v62 = vmul.f32 %v1973_v6, %v4574_v43 }
 0x3e0   :  { %v2157_v3 = vcombine.high %v1977_v62, %v1977_v62 }
 0x3e1   :  { %2576 = vrot.lane.b32.xlu1 %v2563_v2, %s4064_s11 }
 0x3e2   :  { %2759 = vrot.lane.b32.xlu0 %v2752_v61, %s4063_s15 }
 0x3e5   :  { %2973 = vrot.lane.b32.xlu1 %v2960_v9, %s4066_s17 }
 0x3e6   :  { %3189 = vrot.lane.b32.xlu0 %v3176_v42, %s4060_s26 }
 0x3e9   :  { %2358 = vrot.lane.b32.xlu1 %v2354_v10, %s4065_s13 }
 0x3ea   :  { %2574 = vrot.lane.b32.xlu0 %v2570_v11, %s4064_s11 }
 0x3ed   :  { %3187 = vrot.lane.b32.xlu1 %v3183_v12, %s4060_s26 }
 0x3ee   :  { %2971 = vrot.lane.b32.xlu0 %v2967_v13, %s4066_s17 }
 0x3f1   :  { %3370 = vrot.lane.b32.xlu1 %v4574_v43, %s4068_s24 }
 0x3f2   :  { %2362 = vrot.lane.b32.xlu0 %v2355_v14, %s4065_s13  ;;  %v3956_v14 = vld [vmem:[%s4872_s6 + $0x8] sm:$0xf] }
 0x3f5   :  { %2578 = vrot.lane.b32.xlu1 %v2571_v16, %s4064_s11 }
 0x3f6   :  { %3368 = vrot.lane.b32.xlu0 %v2751_v51, %s4068_s24 }
 0x3f9   :  { %3372 = vrot.lane.b32.xlu1 %v2752_v61, %s4068_s24 }
 0x3fa   :  { %3366 = vrot.lane.b32.xlu0 %v4578_v23, %s4068_s24 }
 0x3fd   :  { %2975 = vrot.lane.b32.xlu1 %v2968_v20, %s4066_s17 }
 0x3fe   :  { %3374 = vrot.lane.b32.xlu0 %v3358_v21, %s4068_s24 }
 0x401   :  { %3584 = vrot.lane.b32.xlu1 %v3580_v25, %s4070_s30  ;;  %v3971_v25 = vld [vmem:[%s4872_s6 + $0x10] sm:$0xf] }
 0x402   :  { %3191 = vrot.lane.b32.xlu0 %v3184_v26, %s4060_s26 }
 0x405   :  { %3582 = vrot.lane.b32.xlu1 %v3572_v19, %s4070_s30 }
 0x406   :  { %3586 = vrot.lane.b32.xlu0 %v3573_v28, %s4070_s30 }
 0x409   :  { %3590 = vrot.lane.b32.xlu1 %v3574_v30, %s4070_s30 }
 0x40a   :  { %3588 = vrot.lane.b32.xlu0 %v3581_v31, %s4070_s30 }
 0x40e   :  { %3756 = vperm.xlu0 %4025, %v3753_v32  }
 0x412   :  { %3797 = vperm.xlu0 %4025, %v3794_v33  }
 0x42f   :  { %v4659_v34 = vpop.permute.xlu1 %2761 }
 0x430   :  { %v1996_v35 = vpop.permute.xlu0 %1995 }
 0x433   :  { %v4661_v36 = vpop.permute.xlu1 %2753 }
 0x434   :  { %v1988_v37 = vpop.permute.xlu0 %1987 }
 0x437   :  { %v1992_v38 = vpop.permute.xlu1 %1991 }
 0x438   :  { %v4663_v39 = vpop.permute.xlu0 %2580 }
 0x43b   :  { %v4670_v47 = vpop.permute.xlu1 %2364 }
 0x43c   :  { %v4672_v48 = vpop.permute.xlu0 %2757 }
 0x43f   :  { %v4674_v51 = vpop.permute.xlu1 %3193 }
 0x440   :  { %v4676_v49 = vpop.permute.xlu0 %2977 }
 0x443   :  { %v2357_v53 = vpop.permute.xlu1 %2356 }
 0x444   :  { %v1990_v54 = vpop.permute.xlu0 %1989 }
 0x445   :  { %v1997_v4 = vsel %vm81_vm4, %v1988_v37, %v1990_v54  ;;  %v1998_v5 = vsel %vm81_vm4, %v1990_v54, %v1992_v38 }
 0x446   :  { %3943 = vmatprep.subr.msk.mxu0 %vm90_vm2, %v1998_v5 }
 0x447   :  { %3944 = vmatpush1.msk.msra.mxu0 %vm90_vm2, %v1997_v4  ;;  %v2756_v23 = vpop.permute.xlu1 %2755 }
 0x448   :  { %v2573_v59 = vpop.permute.xlu0 %2572  ;;  %3949 = vmatprep.subr.msk.mxu0 %vm90_vm2, %v2156_v58  ;;  %3945 = vmatmul.mubr.msk.f32.vlgmr.msra.gmra.mxu0 %vm86_vm1, %v3942_v57  ;;  %v2764_v41 = vsel %vm855_vm9, %v2756_v23, %v4672_v48  ;;  %v2763_v19 = vsel %vm855_vm9, %v4661_v36, %v2756_v23 }
 0x449   :  { %3950 = vmatpush1.msk.msra.mxu0 %vm90_vm2, %v1976_v52  ;;  %2233 = vmatprep.mubr.f32.mxu0 %v4067_v24 }
 0x44b   :  { %v4695_v60 = vpop.permute.xlu1 %3185 }
 0x44c   :  { %v2970_v61 = vpop.permute.xlu0 %2969  ;;  %3951 = vmatmul.mubr.msk.f32.vlgmr.msra.gmra.mxu0 %vm86_vm1, %v1978_v7 }
 0x44d   :  { %2445 = vmatprep.mubr.f32.mxu0 %v4067_v24 }
 0x44f   :  { %v1994_v63 = vpop.permute.xlu1 %1993 }
 0x450   :  { %v2361_v0 = vpop.permute.xlu0 %2360  ;;  %v1999_v1 = vsel %vm81_vm4, %v1992_v38, %v1994_v63  ;;  %v2000_v2 = vsel %vm81_vm4, %v1994_v63, %v1996_v35  ;;  %v3979_v35 = vld [vmem:[%s4872_s6 + $0x14] sm:$0xf]  ;;  %vm4881_vm4 = vmmov %vm4879_vm0 }
 0x451   :  { %3946 = vmatprep.subr.msk.mxu1 %vm90_vm2, %v2000_v2 }
 0x452   :  { %3947 = vmatpush1.msk.msra.mxu1 %vm90_vm2, %v1999_v1 }
 0x453   :  { %3952 = vmatprep.subr.msk.mxu1 %vm90_vm2, %v2157_v3  ;;  %v2577_v8 = vpop.permute.xlu1 %2576  ;;  %3948 = vmatmul.mubr.msk.f32.vlgmr.msra.gmra.mxu1 %vm86_vm1, %v3942_v57 }
 0x454   :  { %v2760_v9 = vpop.permute.xlu0 %2759  ;;  %3953 = vmatpush1.msk.msra.mxu1 %vm90_vm2, %v1977_v62  ;;  %2304 = vmatprep.mubr.f32.mxu1 %v4067_v24 }
 0x455   :  { %v2766_v36 = vsel %vm855_vm9, %v2760_v9, %v4659_v34  ;;  %v2765_v38 = vsel %vm855_vm9, %v4672_v48, %v2760_v9 }
 0x457   :  { %v4708_v43 = vpop.permute.xlu1 %2973  ;;  %3954 = vmatmul.mubr.msk.f32.vlgmr.msra.gmra.mxu1 %vm86_vm1, %v1978_v7 }
 0x458   :  { %v4711_v42 = vpop.permute.xlu0 %3189  ;;  %2516 = vmatprep.mubr.f32.mxu1 %v4067_v24 }
 0x45b   :  { %v2359_v10 = vpop.permute.xlu1 %2358 }
 0x45c   :  { %v2575_v11 = vpop.permute.xlu0 %2574  ;;  %v2366_v12 = vsel %vm454_vm7, %v2357_v53, %v2359_v10  ;;  %v2367_v13 = vsel %vm454_vm7, %v2359_v10, %v2361_v0  ;;  %v3994_v53 = vld [vmem:[%s4872_s6 + $0x1c] sm:$0xf] }
 0x45d   :  { %3957 = vmatprep.subr.msk.mxu0 %vm90_vm2, %v2367_v13  ;;  %v2583_v15 = vsel %vm673_vm8, %v2575_v11, %v2577_v8  ;;  %v2582_v16 = vsel %vm673_vm8, %v2573_v59, %v2575_v11  ;;  %v4002_v59 = vld [vmem:[%s4872_s6 + $0x20] sm:$0xf] }
 0x45e   :  { %3958 = vmatpush1.msk.msra.mxu0 %vm90_vm2, %v2366_v12 }
 0x45f   :  { %3959 = vmatmul.mubr.msk.f32.vlgmr.msra.gmra.mxu0 %vm86_vm1, %v3956_v14  ;;  %3965 = vmatprep.subr.msk.mxu0 %vm90_vm2, %v2583_v15  ;;  %v3188_v44 = vpop.permute.xlu1 %3187 }
 0x460   :  { %v2972_v17 = vpop.permute.xlu0 %2971  ;;  %3966 = vmatpush1.msk.msra.mxu0 %vm90_vm2, %v2582_v16  ;;  %2661 = vmatprep.mubr.f32.mxu0 %v4067_v24  ;;  %v3196_v30 = vsel %vm1266_vm5, %v3188_v44, %v4711_v42 }
 0x461   :  { %3972 = vmatprep.subr.msk.mxu0 %vm90_vm2, %v2764_v41  ;;  %v2980_v21 = vsel %vm1074_vm10, %v2972_v17, %v4708_v43  ;;  %v2979_v28 = vsel %vm1074_vm10, %v2970_v61, %v2972_v17 }
 0x463   :  { %3967 = vmatmul.mubr.msk.f32.vlgmr.msra.gmra.mxu0 %vm86_vm1, %v3964_v18  ;;  %v4736_v20 = vpop.permute.xlu1 %3370 }
 0x464   :  { %v2363_v22 = vpop.permute.xlu0 %2362  ;;  %3973 = vmatpush1.msk.msra.mxu0 %vm90_vm2, %v2763_v19  ;;  %2842 = vmatprep.mubr.f32.mxu0 %v4067_v24 }
 0x465   :  { %v2368_v26 = vsel %vm454_vm7, %v2361_v0, %v2363_v22  ;;  %v2369_v27 = vsel %vm454_vm7, %v2363_v22, %v4670_v47  ;;  %3980 = vmatprep.subr.msk.mxu0 %vm90_vm2, %v2980_v21 }
 0x466   :  { %3960 = vmatprep.subr.msk.mxu1 %vm90_vm2, %v2369_v27 }
 0x467   :  { %3961 = vmatpush1.msk.msra.mxu1 %vm90_vm2, %v2368_v26  ;;  %3974 = vmatmul.mubr.msk.f32.vlgmr.msra.gmra.mxu0 %vm86_vm1, %v3971_v25  ;;  %v2579_v29 = vpop.permute.xlu1 %2578 }
 0x468   :  { %v3369_v31 = vpop.permute.xlu0 %3368  ;;  %3962 = vmatmul.mubr.msk.f32.vlgmr.msra.gmra.mxu1 %vm86_vm1, %v3956_v14  ;;  %3981 = vmatpush1.msk.msra.mxu0 %vm90_vm2, %v2979_v28  ;;  %v2584_v32 = vsel %vm673_vm8, %v2577_v8, %v2579_v29  ;;  %v2585_v33 = vsel %vm673_vm8, %v2579_v29, %v4663_v39  ;;  %v3195_v39 = vsel %vm1266_vm5, %v4695_v60, %v3188_v44 }
 0x469   :  { %3988 = vmatprep.subr.msk.mxu0 %vm90_vm2, %v3196_v30  ;;  %3968 = vmatprep.subr.msk.mxu1 %vm90_vm2, %v2585_v33  ;;  %v3377_v34 = vsel %vm4879_vm0, %v3369_v31, %v4736_v20 }
 0x46a   :  { %3969 = vmatpush1.msk.msra.mxu1 %vm90_vm2, %v2584_v32  ;;  %2732 = vmatprep.mubr.f32.mxu1 %v4067_v24 }
 0x46b   :  { %3058 = vmatprep.mubr.f32.mxu0 %v4067_v24  ;;  %3975 = vmatprep.subr.msk.mxu1 %vm90_vm2, %v2766_v36  ;;  %v3373_v37 = vpop.permute.xlu1 %3372 }
 0x46c   :  { %v3367_v40 = vpop.permute.xlu0 %3366  ;;  %3970 = vmatmul.mubr.msk.f32.vlgmr.msra.gmra.mxu1 %vm86_vm1, %v3964_v18  ;;  %3982 = vmatmul.mubr.msk.f32.vlgmr.msra.gmra.mxu0 %vm86_vm1, %v3979_v35  ;;  %v3378_v57 = vsel %vm4882_vm6, %v4736_v20, %v3373_v37 }
 0x46d   :  { %3989 = vmatpush1.msk.msra.mxu0 %vm90_vm2, %v3195_v39  ;;  %3976 = vmatpush1.msk.msra.mxu1 %vm90_vm2, %v2765_v38  ;;  %v3376_v47 = vsel %vm4880_vm3, %v3367_v40, %v3369_v31 }
 0x46e   :  { %3995 = vmatprep.subr.msk.mxu0 %vm90_vm2, %v3377_v34  ;;  %2913 = vmatprep.mubr.f32.mxu1 %v4067_v24 }
 0x46f   :  { %3274 = vmatprep.mubr.f32.mxu0 %v4067_v24  ;;  %v2976_v46 = vpop.permute.xlu1 %2975 }
 0x470   :  { %v3375_v48 = vpop.permute.xlu0 %3374  ;;  %3977 = vmatmul.mubr.msk.f32.vlgmr.msra.gmra.mxu1 %vm86_vm1, %v3971_v25  ;;  %3990 = vmatmul.mubr.msk.f32.vlgmr.msra.gmra.mxu0 %vm86_vm1, %v3987_v45  ;;  %v2981_v50 = vsel %vm1074_vm10, %v4708_v43, %v2976_v46  ;;  %v2982_v52 = vsel %vm1074_vm10, %v2976_v46, %v4676_v49 }
 0x471   :  { %3996 = vmatpush1.msk.msra.mxu0 %vm90_vm2, %v3376_v47  ;;  %3983 = vmatprep.subr.msk.mxu1 %vm90_vm2, %v2982_v52  ;;  %v3379_v4 = vsel %vm4881_vm4, %v3373_v37, %v3375_v48 }
 0x472   :  { %3984 = vmatpush1.msk.msra.mxu1 %vm90_vm2, %v2981_v50  ;;  %3129 = vmatprep.mubr.f32.mxu1 %v4067_v24 }
 0x473   :  { %3455 = vmatprep.mubr.f32.mxu0 %v4067_v24  ;;  %v3585_v54 = vpop.permute.xlu1 %3584 }
 0x474   :  { %v3192_v55 = vpop.permute.xlu0 %3191  ;;  %3985 = vmatmul.mubr.msk.f32.vlgmr.msra.gmra.mxu1 %vm86_vm1, %v3979_v35  ;;  %3997 = vmatmul.mubr.msk.f32.vlgmr.msra.gmra.mxu0 %vm86_vm1, %v3994_v53 }
 0x475   :  { %v3197_v49 = vsel %vm1266_vm5, %v4711_v42, %v3192_v55  ;;  %v3198_v56 = vsel %vm1266_vm5, %v3192_v55, %v4674_v51  ;;  %3345 = vmatprep.mubr.f32.mxu1 %v4067_v24  ;;  %3671 = vmatprep.mubr.f32.mxu0 %v4067_v24  ;;  %vm4883_vm5 = vcmask 490496  }
 0x476   :  { %3991 = vmatprep.subr.msk.mxu1 %vm90_vm2, %v3198_v56  ;;  %vm4884_vm7 = vmmov %vm4883_vm5 }
 0x477   :  { %3992 = vmatpush1.msk.msra.mxu1 %vm90_vm2, %v3197_v49  ;;  %v3583_v5 = vpop.permute.xlu1 %3582  ;;  %vm4885_vm8 = vmmov %vm4883_vm5 }
 0x478   :  { %v3587_v58 = vpop.permute.xlu0 %3586  ;;  %3993 = vmatmul.mubr.msk.f32.vlgmr.msra.gmra.mxu1 %vm86_vm1, %v3987_v45  ;;  %3998 = vmatprep.subr.msk.mxu1 %vm90_vm2, %v3379_v4  ;;  %v3592_v51 = vsel %vm4883_vm5, %v3583_v5, %v3585_v54  ;;  %vm4886_vm10 = vmmov %vm4883_vm5 }
 0x479   :  { %v3593_v23 = vsel %vm4884_vm7, %v3585_v54, %v3587_v58  ;;  %3999 = vmatpush1.msk.msra.mxu1 %vm90_vm2, %v3378_v57  ;;  %3526 = vmatprep.mubr.f32.mxu1 %v4067_v24 }
 0x47a   :  { %4003 = vmatprep.subr.msk.mxu0 %vm90_vm2, %v3593_v23 }
 0x47b   :  { %4004 = vmatpush1.msk.msra.mxu0 %vm90_vm2, %v3592_v51  ;;  %v3591_v6 = vpop.permute.xlu1 %3590 }
 0x47c   :  { %v3589_v7 = vpop.permute.xlu0 %3588  ;;  %4000 = vmatmul.mubr.msk.f32.vlgmr.msra.gmra.mxu1 %vm86_vm1, %v3994_v53  ;;  %4005 = vmatmul.mubr.msk.f32.vlgmr.msra.gmra.mxu0 %vm86_vm1, %v4002_v59 }
 0x47d   :  { %v3594_v60 = vsel %vm4885_vm8, %v3587_v58, %v3589_v7  ;;  %v3595_v61 = vsel %vm4886_vm10, %v3589_v7, %v3591_v6  ;;  %3742 = vmatprep.mubr.f32.mxu1 %v4067_v24 }
 0x47e   :  { %4006 = vmatprep.subr.msk.mxu1 %vm90_vm2, %v3595_v61 }
 0x47f   :  { %4007 = vmatpush1.msk.msra.mxu1 %vm90_vm2, %v3594_v60 }
 0x480   :  { %4008 = vmatmul.mubr.msk.f32.vlgmr.msra.gmra.mxu1 %vm86_vm1, %v4002_v59 }
 0x489   :  { %v3757_v5 = vpop.permute.xlu0 %3756 }
 0x508   :  { %v2078_v62 = vpop.f32.mrf.mxu0 }
 0x50a   :  { %v2080_v63 = vpop.f32.mrf.mxu0 }
 0x50c   :  { %v2235_v0 = vpop.f32.mrf.mxu0 }
 0x50d   :  { %v2236_v17 = vadd.f32 %v2235_v0, %v2078_v62 }
 0x50e   :  { %v2237_v2 = vpop.f32.mrf.mxu0 }
 0x50f   :  { %v2238_v20 = vadd.f32 %v2237_v2, %v2080_v63 }
 0x513   :  { %v2149_v1 = vpop.f32.mrf.mxu1 }
 0x515   :  { %v2151_v3 = vpop.f32.mrf.mxu1 }
 0x517   :  { %v2306_v43 = vpop.f32.mrf.mxu1 }
 0x518   :  { %v2307_v26 = vadd.f32 %v2306_v43, %v2149_v1 }
 0x519   :  { %v2308_v11 = vpop.f32.mrf.mxu1 }
 0x51a   :  { %v2309_v30 = vadd.f32 %v2308_v11, %v2151_v3 }
 0x51f   :  { %v2447_v8 = vpop.f32.mrf.mxu0 }
 0x520   :  { %v2523_v21 = vadd.f32 %v2447_v8, %v2236_v17 }
 0x521   :  { %v2449_v9 = vpop.f32.mrf.mxu0 }
 0x522   :  { %v2524_v27 = vadd.f32 %v2449_v9, %v2238_v20 }
 0x523   :  { %v2663_v42 = vpop.f32.mrf.mxu0 }
 0x524   :  { %v2739_v28 = vadd.f32 %v2663_v42, %v2523_v21 }
 0x525   :  { %v2665_v10 = vpop.f32.mrf.mxu0 }
 0x526   :  { %v2740_v31 = vadd.f32 %v2665_v10, %v2524_v27 }
 0x527   :  { %v2844_v12 = vpop.f32.mrf.mxu0 }
 0x528   :  { %v2518_v24 = vpop.f32.mrf.mxu1  ;;  %v2920_v33 = vadd.f32 %v2844_v12, %v2739_v28 }
 0x529   :  { %v2846_v13 = vpop.f32.mrf.mxu0  ;;  %v2525_v32 = vadd.f32 %v2518_v24, %v2307_v26 }
 0x52a   :  { %v2520_v14 = vpop.f32.mrf.mxu1  ;;  %v2921_v38 = vadd.f32 %v2846_v13, %v2740_v31 }
 0x52b   :  { %v2526_v37 = vadd.f32 %v2520_v14, %v2309_v30 }
 0x52c   :  { %v2734_v15 = vpop.f32.mrf.mxu1  ;;  %v3060_v16 = vpop.f32.mrf.mxu0 }
 0x52d   :  { %v2741_v39 = vadd.f32 %v2734_v15, %v2525_v32  ;;  %v3136_v40 = vadd.f32 %v3060_v16, %v2920_v33  ;;  %v3810_v15 = vld [vmem:[%s4875_s9] sm:$0xf] }
 0x52e   :  { %v2736_v44 = vpop.f32.mrf.mxu1  ;;  %v3062_v41 = vpop.f32.mrf.mxu0  ;;  %v3791_v16 = vld [vmem:[%s4866_s0] sm:$0xff] }
 0x52f   :  { %v2742_v45 = vadd.f32 %v2736_v44, %v2526_v37  ;;  %v3137_v46 = vadd.f32 %v3062_v41, %v2921_v38  ;;  %v3792_v44 = vld [vmem:[%s4866_s0 + $0x8] sm:$0xff]  ;;  %v3793_v41 = vld [vmem:[%s4866_s0 + $0x10] sm:$0xf]  ;;  %v3823_v37 = vcombine.high %v3791_v16, %v3791_v16  ;;  %s4072_s0 = smov [#allocation3]  }
 0x530   :  { %v2915_v18 = vpop.f32.mrf.mxu1  ;;  %v3276_v19 = vpop.f32.mrf.mxu0  ;;  %v3824_v38 = vcombine.high %v3792_v44, %v3792_v44  ;;  %s3867_s9 = sshll.u32 %s4072_s0, 4  ;;  %s3868_s9 = int_to_ptr.vmem [resolvable:$true] %s3867_s9 }
 0x531   :  { %v2922_v47 = vadd.f32 %v2915_v18, %v2741_v39  ;;  %v3352_v48 = vadd.f32 %v3276_v19, %v3136_v40  ;;  %v3798_v39 = vpop.permute.xlu0 %3797  ;;  %p4040_p1 = scmp.lt.s32.totalorder %s3868_s9, %s3868_s9 }
 0x532   :  { %v2917_v22 = vpop.f32.mrf.mxu1  ;;  %v3278_v25 = vpop.f32.mrf.mxu0 }
 0x533   :  { %v2923_v53 = vadd.f32 %v2917_v22, %v2742_v45  ;;  %v3353_v54 = vadd.f32 %v3278_v25, %v3137_v46 }
 0x534   :  { %v3131_v29 = vpop.f32.mrf.mxu1  ;;  %v3457_v35 = vpop.f32.mrf.mxu0 }
 0x535   :  { %v3138_v55 = vadd.f32 %v3131_v29, %v2922_v47  ;;  %v3533_v49 = vadd.f32 %v3457_v35, %v3352_v48 }
 0x536   :  { %v3133_v36 = vpop.f32.mrf.mxu1  ;;  %v3459_v50 = vpop.f32.mrf.mxu0 }
 0x537   :  { %v3139_v57 = vadd.f32 %v3133_v36, %v2923_v53  ;;  %v3534_v58 = vadd.f32 %v3459_v50, %v3353_v54 }
 0x538   :  { %v3347_v34 = vpop.f32.mrf.mxu1 }
 0x539   :  { %v3354_v51 = vadd.f32 %v3347_v34, %v3138_v55 }
 0x53a   :  { %v3349_v52 = vpop.f32.mrf.mxu1 }
 0x53b   :  { %v3355_v7 = vadd.f32 %v3349_v52, %v3139_v57 }
 0x53c   :  { %v3528_v56 = vpop.f32.mrf.mxu1  ;;  %v3673_v4 = vpop.f32.mrf.mxu0 }
 0x53d   :  { %v3749_v23 = vadd.f32 %v3673_v4, %v3533_v49  ;;  %v3535_v60 = vadd.f32 %v3528_v56, %v3354_v51 }
 0x53e   :  { %v3530_v59 = vpop.f32.mrf.mxu1  ;;  %v3675_v6 = vpop.f32.mrf.mxu0 }
 0x53f   :  { %v3759_v61 = vadd.f32 %v3757_v5, %v3749_v23  ;;  %v3750_v62 = vadd.f32 %v3675_v6, %v3534_v58  ;;  %v3536_v0 = vadd.f32 %v3530_v59, %v3355_v7 }
 0x540   :  { %v3744_v63 = vpop.f32.mrf.mxu1 }
 0x541   :  { %v3760_v1 = vadd.f32 %v3757_v5, %v3750_v62  ;;  %v3751_v2 = vadd.f32 %v3744_v63, %v3535_v60  ;;  %v3763_v8 = vsel %vm90_vm2, %v3759_v61, 0.0 }
 0x542   :  { %v3746_v3 = vpop.f32.mrf.mxu1 }
 0x543   :  { %v3764_v9 = vsel %vm90_vm2, %v3760_v1, 0.0  ;;  %v3761_v43 = vadd.f32 %v3757_v5, %v3751_v2  ;;  %v3752_v42 = vadd.f32 %v3746_v3, %v3536_v0 }
 0x544   :  { %v3765_v10 = vadd.f32 %v3764_v9, %v3763_v8 }
 0x545   :  { %v3766_v11 = vsel %vm90_vm2, %v3761_v43, 0.0  ;;  %v3762_v12 = vadd.f32 %v3757_v5, %v3752_v42 }
 0x546   :  { %v3767_v24 = vadd.f32 %v3766_v11, %v3765_v10 }
 0x547   :  { %v3768_v13 = vsel %vm90_vm2, %v3762_v12, 0.0 }
 0x548   :  { %v3769_v14 = vadd.f32 %v3768_v13, %v3767_v24 }
 0x54a   :  { %3770 = vadd.xlane.f32.xlu1 %v3769_v14 }
 0x55b   :  { %3813 = vperm.xlu1 %4026, %v3810_v15  }
 0x55f   :  { %3825 = vrot.lane.b32.xlu1 %v3791_v16, %s4063_s15 }
 0x563   :  { %3829 = vrot.lane.b32.xlu1 %v3792_v44, %s4063_s15 }
 0x567   :  { %3833 = vrot.lane.b32.xlu1 %v3793_v41, %s4063_s15 }
 0x5d3   :  { %v3771_v17 = vpop.xlane.xlu1 %3770 }
 0x5d4   :  { %v3772_v18 = vmul.f32 0.001953125, %v3771_v17 }
 0x5d6   :  { %v3773_v19 = vsub.f32 %v3759_v61, %v3772_v18  ;;  %v3774_v20 = vsub.f32 %v3760_v1, %v3772_v18  ;;  %v3775_v21 = vsub.f32 %v3761_v43, %v3772_v18  ;;  %v3776_v22 = vsub.f32 %v3762_v12, %v3772_v18 }
 0x5d7   :  { %v3814_v34 = vpop.permute.xlu1 %3813 }
 0x5d8   :  { %v3777_v25 = vmul.f32 %v3773_v19, %v3773_v19  ;;  %v3778_v26 = vmul.f32 %v3774_v20, %v3774_v20  ;;  %v3779_v27 = vmul.f32 %v3775_v21, %v3775_v21  ;;  %v3780_v28 = vmul.f32 %v3776_v22, %v3776_v22 }
 0x5d9   :  { %v3800_v52 = vmul.f32 %v3798_v39, %v3773_v19  ;;  %v3801_v53 = vmul.f32 %v3798_v39, %v3774_v20  ;;  %v3802_v54 = vmul.f32 %v3798_v39, %v3775_v21  ;;  %v3803_v55 = vmul.f32 %v3798_v39, %v3776_v22 }
 0x5da   :  { %v3781_v29 = vsel %vm90_vm2, %v3777_v25, 0.0  ;;  %v3782_v30 = vsel %vm90_vm2, %v3778_v26, 0.0  ;;  %v3784_v32 = vsel %vm90_vm2, %v3779_v27, 0.0  ;;  %v3786_v35 = vsel %vm90_vm2, %v3780_v28, 0.0 }
 0x5db   :  { %v3783_v31 = vadd.f32 %v3782_v30, %v3781_v29  ;;  %v3826_v47 = vpop.permute.xlu1 %3825 }
 0x5dd   :  { %v3785_v33 = vadd.f32 %v3784_v32, %v3783_v31 }
 0x5df   :  { %v3787_v36 = vadd.f32 %v3786_v35, %v3785_v33  ;;  %v3830_v48 = vpop.permute.xlu1 %3829 }
 0x5e1   :  { %3788 = vadd.xlane.f32.xlu0 %v3787_v36 }
 0x5e3   :  { %v3834_v49 = vpop.permute.xlu1 %3833 }
 0x5f7   :  { %3827 = vrot.lane.b32.xlu0 %v3823_v37, %s4063_s15 }
 0x5fb   :  { %3831 = vrot.lane.b32.xlu0 %v3824_v38, %s4063_s15  ;;  %s4035_s15 = scalar_lea.vmem %s3868_s9, 256 }
 0x5fc   :  { %p4036_p0 = scmp.ne.s32.totalorder %s3868_s9, %s4035_s15  ;;  %p4041_p2 = scmp.lt.s32.totalorder %s4035_s15, %s4035_s15 }
 0x5fe   :  { %p4042_p3 = por %p4041_p2, %p4040_p1 }
 0x600   :  { %p4043_p4 = pnand %p4042_p3, %p4036_p0 }
 0x66a   :  { %v3789_v40 = vpop.xlane.xlu0 %3788 }
 0x66b   :  { %v3790_v45 = vmul.f32 0.001953125, %v3789_v40 }
 0x66d   :  { %v3804_v46 = vadd.f32 1e-05, %v3790_v45 }
 0x66e   :  { %v3828_v50 = vpop.permute.xlu0 %3827 }
 0x66f   :  { %4033 = vrsqrt.f32 %v3804_v46  ;;  %v3835_v61 = vsel %vm855_vm9, %v3826_v47, %v3828_v50  ;;  %v3836_v62 = vsel %vm855_vm9, %v3828_v50, %v3830_v48 }
 0x672   :  { %v3832_v58 = vpop.permute.xlu0 %3831 }
 0x673   :  { %v3838_v23 = vsel %vm855_vm9, %v3832_v58, %v3834_v49  ;;  %v3837_v63 = vsel %vm855_vm9, %v3830_v48, %v3832_v58 }
 0x67c   :  { %v4034_v56 = vpop.eup %4033 }
 0x67d   :  { %v3806_v4 = vmul.f32 %v4034_v56, %v3800_v52  ;;  %v3807_v5 = vmul.f32 %v4034_v56, %v3801_v53  ;;  %v3808_v57 = vmul.f32 %v4034_v56, %v3802_v54  ;;  %v3809_v51 = vmul.f32 %v4034_v56, %v3803_v55 }
 0x67f   :  { %v3816_v59 = vadd.f32 %v3814_v34, %v3806_v4  ;;  %v3817_v6 = vadd.f32 %v3814_v34, %v3807_v5  ;;  %v3818_v7 = vadd.f32 %v3814_v34, %v3808_v57  ;;  %v3819_v60 = vadd.f32 %v3814_v34, %v3809_v51 }
 0x681   :  { %v3843_v0 = vadd.f32 %v3835_v61, %v3816_v59  ;;  %v3844_v1 = vadd.f32 %v3836_v62, %v3817_v6  ;;  %v3845_v2 = vadd.f32 %v3837_v63, %v3818_v7  ;;  %v3846_v3 = vadd.f32 %v3838_v23, %v3819_v60 }
 0x683   :  { %v3847_v8 = vmax.f32 %v3843_v0, 0.0  ;;  %v3848_v9 = vmax.f32 %v3844_v1, 0.0  ;;  %v3849_v43 = vmax.f32 %v3845_v2, 0.0  ;;  %v3850_v42 = vmax.f32 %v3846_v3, 0.0 }
 0x685   :  { %v3855_v10 = vcombine.low %v3847_v8, %v3848_v9  ;;  %v3856_v11 = vcombine.low %v3849_v43, %v3850_v42 }
 0x687   :  { %3859 = vst [vmem:[#allocation3] sm:$0xff] %v3855_v10  ;;  %3860 = vst [vmem:[#allocation3 + $0x8] sm:$0xff] %v3856_v11 }
 0x688   :  { %4046 = shalt.err (!%p4043_p4)
}
 0x689   :  { %3870 = dma.vmem_to_hbm [thread:$0]  %s3868_s9, 256, %s4876_s10, [#allocation4]  }
 0x68a   :  { %4055 = dma.done.wait [#allocation4], 256  }
 0x68b   :  { %4056 = vsyncadd [#allocation4], 4294967040 }
 0x68c   :  { %3874 = vsyncpa [#allocation4], 1 }

</bundles_post_ra>
